<compile_context>
chip_gen: v5e
topology: v5e:2x2
jax: 0.10.0
libtpu: 0.0.40
codegen_flags: <defaults>
</compile_context>

<pallas_src>
import functools

import jax
import jax.numpy as jnp
from jax.experimental import pallas as pl
from jax.experimental.pallas import tpu as pltpu


def _gelu_tanh(x):
    # tanh-approximate GELU (same formula used in kernel and reference).
    c = 0.7978845608028654  # sqrt(2/pi)
    return 0.5 * x * (1.0 + jnp.tanh(c * (x + 0.044715 * x * x * x)))


# ----------------------------------------------------------------------------
# Pallas kernel: full RDB forward for one image, channels-major / flat-spatial.
# ----------------------------------------------------------------------------
def _rdb_kernel(x_ref, mask_ref, *refs, num_layer, c_in, growth, H, W, base):
    # refs layout (matches the wrapper):
    #   for each dense layer i: w_slab (growth, 9*K_i) bf16, bias (growth, 1) f32
    #   w1 (c_in, C_final) bf16, b1 (c_in, 1) f32,
    #   o_ref (1, c_in, P) f32,
    #   f_ref VMEM scratch (C_final, base + P + guard) bf16  [persistent]
    P = (H + 2) * (W + 2)
    Wp = W + 2

    w_refs = [refs[2 * i] for i in range(num_layer)]
    b_refs = [refs[2 * i + 1] for i in range(num_layer)]
    w1_ref = refs[2 * num_layer]
    b1_ref = refs[2 * num_layer + 1]
    o_ref = refs[2 * num_layer + 2]
    f_ref = refs[2 * num_layer + 3]

    # Zero the persistent feature scratch once (pad ring + guard zones).  Every
    # later write either comes from the pre-padded input (zero ring) or is
    # border-masked, so the zeros stay valid across all grid steps.
    @pl.when(pl.program_id(0) == 0)
    def _():
        f_ref[...] = jnp.zeros(f_ref.shape, f_ref.dtype)

    interior = mask_ref[...] > 0.5          # (1, P) bool; False on the pad ring

    x_f32 = x_ref[0]                        # (c_in, P) f32, zero-padded ring
    x_bf = x_f32.astype(jnp.bfloat16)
    f_ref[0:c_in, base:base + P] = x_bf

    # Fused conv1x1 accumulator: x-chunk contribution + bias + residual.
    out = (jnp.dot(w1_ref[:, 0:c_in], x_bf, preferred_element_type=jnp.float32)
           + b1_ref[...] + x_f32)

    # Flat-index offsets of the 9 conv taps over the (H+2, W+2) padded grid.
    offs = [(dy - 1) * Wp + (dx - 1) for dy in range(3) for dx in range(3)]

    for i in range(num_layer):
        k_i = c_in + i * growth
        acc = jnp.zeros((growth, P), dtype=jnp.float32)
        for t, off in enumerate(offs):
            lhs = w_refs[i][:, t * k_i:(t + 1) * k_i]          # (G, K_i)  bf16
            rhs = f_ref[0:k_i, base + off: base + off + P]     # (K_i, P)  bf16
            acc = acc + jnp.dot(lhs, rhs, preferred_element_type=jnp.float32)
        y = _gelu_tanh(acc + b_refs[i][...])                   # f32 math
        y = jnp.where(interior, y, 0.0)      # keep the zero pad ring intact
        y_bf = y.astype(jnp.bfloat16)
        c0 = c_in + i * growth
        f_ref[c0:c0 + growth, base:base + P] = y_bf
        # Fused conv1x1 contribution of this layer's fresh features.
        out = out + jnp.dot(w1_ref[:, c0:c0 + growth], y_bf,
                            preferred_element_type=jnp.float32)

    o_ref[0] = out.astype(o_ref.dtype)       # lane-dense (c_in, P) store


# ----------------------------------------------------------------------------
# Wrapper (PyTorch NCHW layout in / out, OIHW weights).
# ----------------------------------------------------------------------------
def rdb_forward_nchw(x_nchw, dense_ws_oihw, dense_bs, w1_oihw, b1):
    B, c_in, H, W = x_nchw.shape
    num_layer = len(dense_ws_oihw)
    growth = dense_ws_oihw[0].shape[0]
    c_final = c_in + num_layer * growth
    P = (H + 2) * (W + 2)
    guard = W + 3                              # max |tap offset|
    base = ((guard + 127) // 128) * 128        # lane-tile aligned image start
    L = base + P + guard                       # feature-buffer lane extent

    # Zero-pad spatially and flatten: (B, C, (H+2)*(W+2)).  The zero ring is
    # exactly the padding=1 semantics of conv3x3.
    x_pad = jnp.pad(x_nchw, ((0, 0), (0, 0), (1, 1), (1, 1))).reshape(B, c_in, P)

    # Interior mask over the padded flat grid (1 inside, 0 on the pad ring).
    rr = jnp.arange(H + 2)
    cc = jnp.arange(W + 2)
    m2 = ((rr >= 1) & (rr <= H))[:, None] & ((cc >= 1) & (cc <= W))[None, :]
    mask = m2.reshape(1, P).astype(jnp.float32)

    args = [x_pad, mask]
    in_specs = [pl.BlockSpec((1, c_in, P), lambda b: (b, 0, 0)),
                pl.BlockSpec((1, P), lambda b: (0, 0))]

    for i in range(num_layer):
        w = dense_ws_oihw[i]                   # (growth, K_i, 3, 3)
        k_i = c_in + i * growth
        assert w.shape == (growth, k_i, 3, 3)
        # im2col slab: column index = tap*K_i + in_channel, tap = dy*3 + dx.
        w_slab = jnp.transpose(w, (0, 2, 3, 1)).reshape(growth, 9 * k_i)
        args.append(w_slab.astype(jnp.bfloat16))
        in_specs.append(pl.BlockSpec((growth, 9 * k_i), lambda b: (0, 0)))
        args.append(dense_bs[i].reshape(growth, 1).astype(jnp.float32))
        in_specs.append(pl.BlockSpec((growth, 1), lambda b: (0, 0)))

    w1 = w1_oihw[:, :, 0, 0]                   # (c_in, c_final)
    assert w1.shape == (c_in, c_final)
    args.append(w1.astype(jnp.bfloat16))
    in_specs.append(pl.BlockSpec((c_in, c_final), lambda b: (0, 0)))
    args.append(b1.reshape(c_in, 1).astype(jnp.float32))
    in_specs.append(pl.BlockSpec((c_in, 1), lambda b: (0, 0)))

    kernel = functools.partial(_rdb_kernel, num_layer=num_layer, c_in=c_in,
                               growth=growth, H=H, W=W, base=base)

    out_pad = pl.pallas_call(
        kernel,
        out_shape=jax.ShapeDtypeStruct((B, c_in, P), x_nchw.dtype),
        grid=(B,),
        in_specs=in_specs,
        out_specs=pl.BlockSpec((1, c_in, P), lambda b: (b, 0, 0)),
        scratch_shapes=[pltpu.VMEM((c_final, L), jnp.bfloat16)],
        compiler_params=pltpu.CompilerParams(
            dimension_semantics=("parallel",)),
    )(*args)

    # Drop the pad ring (cheap XLA slice outside the kernel).
    out = out_pad.reshape(B, c_in, H + 2, W + 2)[:, :, 1:H + 1, 1:W + 1]
    return out


# ----------------------------------------------------------------------------
# Pure-JAX reference (NCHW, PyTorch-layout weights) for the self-check.
# ----------------------------------------------------------------------------
def rdb_reference_nchw(x, dense_ws_oihw, dense_bs, w1_oihw, b1):
    feats = x
    for w, b in zip(dense_ws_oihw, dense_bs):
        y = jax.lax.conv_general_dilated(
            feats, w, (1, 1), "SAME",
            dimension_numbers=("NCHW", "OIHW", "NCHW"),
            precision=jax.lax.Precision.HIGHEST)
        y = _gelu_tanh(y + b[None, :, None, None])
        feats = jnp.concatenate([feats, y], axis=1)
    out = jax.lax.conv_general_dilated(
        feats, w1_oihw, (1, 1), "SAME",
        dimension_numbers=("NCHW", "OIHW", "NCHW"),
        precision=jax.lax.Precision.HIGHEST)
    out = out + b1[None, :, None, None]
    return out + x


# ----------------------------------------------------------------------------
# Demo / self-check
# ----------------------------------------------------------------------------
if __name__ == "__main__":
    B, C_in, growth, num_layer, H, W = 2, 8, 4, 3, 16, 16

    key = jax.random.PRNGKey(0)
    keys = jax.random.split(key, 2 * num_layer + 3)

    x = jax.random.normal(keys[0], (B, C_in, H, W), dtype=jnp.float32)

    dense_ws, dense_bs = [], []
    c = C_in
    for i in range(num_layer):
        dense_ws.append(0.1 * jax.random.normal(keys[1 + 2 * i], (growth, c, 3, 3),
                                                dtype=jnp.float32))
        dense_bs.append(0.1 * jax.random.normal(keys[2 + 2 * i], (growth,),
                                                dtype=jnp.float32))
        c += growth
    w1 = 0.1 * jax.random.normal(keys[1 + 2 * num_layer], (C_in, c, 1, 1),
                                 dtype=jnp.float32)
    b1 = 0.1 * jax.random.normal(keys[2 + 2 * num_layer], (C_in,),
                                 dtype=jnp.float32)

    out = rdb_forward_nchw(x, dense_ws, dense_bs, w1, b1)
    out = jax.block_until_ready(out)

    ref = rdb_reference_nchw(x, dense_ws, dense_bs, w1, b1)
    assert out.shape == x.shape and out.dtype == x.dtype
    max_diff = float(jnp.max(jnp.abs(out - ref)))
    # bf16 MXU operands vs. the f32 HIGHEST XLA-conv reference: tolerance is
    # intentionally loose (per the perf review, this is a precision trade, not
    # a bug).
    assert max_diff < 0.15, f"max |out - ref| = {max_diff}"

    print("KERNEL_OK")
</pallas_src>

<mosaic_0001>
module attributes {stable_mosaic.version = 11 : i64} {
  func.func @_rdb_kernel(%arg0: i32, %arg1: memref<1x8x324xf32, #tpu.memory_space<vmem>>, %arg2: memref<1x324xf32, #tpu.memory_space<vmem>>, %arg3: memref<4x72xbf16, #tpu.memory_space<vmem>>, %arg4: memref<4x1xf32, #tpu.memory_space<vmem>>, %arg5: memref<4x108xbf16, #tpu.memory_space<vmem>>, %arg6: memref<4x1xf32, #tpu.memory_space<vmem>>, %arg7: memref<4x144xbf16, #tpu.memory_space<vmem>>, %arg8: memref<4x1xf32, #tpu.memory_space<vmem>>, %arg9: memref<8x20xbf16, #tpu.memory_space<vmem>>, %arg10: memref<8x1xf32, #tpu.memory_space<vmem>>, %arg11: memref<1x8x324xf32, #tpu.memory_space<vmem>>, %arg12: memref<20x471xbf16, #tpu.memory_space<vmem>>) attributes {dimension_semantics = [#tpu.dimension_semantics<parallel>], iteration_bounds = array<i64: 2>, scalar_prefetch = 0 : i64, scratch_operands = 1 : i64, tpu.core_type = #tpu.core_type<tc>, window_params = [{transform_indices = @transform_0, window_bounds = array<i64: 1, 8, 324>}, {pipeline_mode = #tpu.pipeline_mode<synchronous>, transform_indices = @transform_1, window_bounds = array<i64: 1, 324>}, {pipeline_mode = #tpu.pipeline_mode<synchronous>, transform_indices = @transform_2, window_bounds = array<i64: 4, 72>}, {pipeline_mode = #tpu.pipeline_mode<synchronous>, transform_indices = @transform_3, window_bounds = array<i64: 4, 1>}, {pipeline_mode = #tpu.pipeline_mode<synchronous>, transform_indices = @transform_4, window_bounds = array<i64: 4, 108>}, {pipeline_mode = #tpu.pipeline_mode<synchronous>, transform_indices = @transform_5, window_bounds = array<i64: 4, 1>}, {pipeline_mode = #tpu.pipeline_mode<synchronous>, transform_indices = @transform_6, window_bounds = array<i64: 4, 144>}, {pipeline_mode = #tpu.pipeline_mode<synchronous>, transform_indices = @transform_7, window_bounds = array<i64: 4, 1>}, {pipeline_mode = #tpu.pipeline_mode<synchronous>, transform_indices = @transform_8, window_bounds = array<i64: 8, 20>}, {pipeline_mode = #tpu.pipeline_mode<synchronous>, transform_indices = @transform_9, window_bounds = array<i64: 8, 1>}, {transform_indices = @transform_10, window_bounds = array<i64: 1, 8, 324>}]} {
    %c0_i32 = arith.constant 0 : i32
    %0 = arith.cmpi eq, %arg0, %c0_i32 : i32
    %1 = arith.extui %0 : i1 to i32
    %c0_i32_0 = arith.constant 0 : i32
    %2 = arith.cmpi ne, %1, %c0_i32_0 : i32
    scf.if %2 {
      %cst_164 = arith.constant 0.000000e+00 : bf16
      %205 = vector.broadcast %cst_164 : bf16 to vector<20x471xbf16>
      %c0_165 = arith.constant 0 : index
      %c0_166 = arith.constant 0 : index
      %206 = vector.load %arg12[%c0_165, %c0_166] : memref<20x471xbf16, #tpu.memory_space<vmem>>, vector<20x471xbf16>
      tpu.vector_store %arg12[%c0_165, %c0_166], %205 {strides = array<i32>} : memref<20x471xbf16, #tpu.memory_space<vmem>>, vector<20x471xbf16>,
    } else {
    }
    %c0 = arith.constant 0 : index
    %c0_1 = arith.constant 0 : index
    %3 = vector.load %arg2[%c0, %c0_1] : memref<1x324xf32, #tpu.memory_space<vmem>>, vector<1x324xf32>
    %cst = arith.constant 5.000000e-01 : f32
    %4 = vector.broadcast %cst : f32 to vector<1x324xf32>
    %5 = arith.cmpf ogt, %3, %4 : vector<1x324xf32>
    %c0_2 = arith.constant 0 : index
    %c0_3 = arith.constant 0 : index
    %c0_4 = arith.constant 0 : index
    %6 = vector.load %arg1[%c0_2, %c0_3, %c0_4] : memref<1x8x324xf32, #tpu.memory_space<vmem>>, vector<1x8x324xf32>
    %7 = vector.shape_cast %6 : vector<1x8x324xf32> to vector<8x324xf32>
    %8 = arith.truncf %7 : vector<8x324xf32> to vector<8x324xbf16>
    %c0_5 = arith.constant 0 : index
    %c128 = arith.constant 128 : index
    %9 = vector.load %arg12[%c0_5, %c128] : memref<20x471xbf16, #tpu.memory_space<vmem>>, vector<8x324xbf16>
    tpu.vector_store %arg12[%c0_5, %c128], %8 {strides = array<i32>} : memref<20x471xbf16, #tpu.memory_space<vmem>>, vector<8x324xbf16>,
    %c0_6 = arith.constant 0 : index
    %c0_7 = arith.constant 0 : index
    %10 = vector.load %arg9[%c0_6, %c0_7] : memref<8x20xbf16, #tpu.memory_space<vmem>>, vector<8x8xbf16>
    %cst_8 = arith.constant dense<0.000000e+00> : vector<8x324xf32>
    %11 = tpu.matmul %10, %8, %cst_8 {dimension_numbers = #tpu.dot_dimension_numbers<[1], [0], [0], [1], [0, 0, 1, 1], [], []>} : vector<8x8xbf16>, vector<8x324xbf16>, vector<8x324xf32> -> vector<8x324xf32>
    %c0_9 = arith.constant 0 : index
    %c0_10 = arith.constant 0 : index
    %12 = vector.load %arg10[%c0_9, %c0_10] : memref<8x1xf32, #tpu.memory_space<vmem>>, vector<8x1xf32>
    %13 = vector.broadcast %12 : vector<8x1xf32> to vector<8x324xf32>
    %14 = arith.addf %11, %13 : vector<8x324xf32>
    %15 = arith.addf %14, %7 : vector<8x324xf32>
    %cst_11 = arith.constant 0.000000e+00 : f32
    %16 = vector.broadcast %cst_11 : f32 to vector<4x324xf32>
    %c0_12 = arith.constant 0 : index
    %c0_13 = arith.constant 0 : index
    %17 = vector.load %arg3[%c0_12, %c0_13] : memref<4x72xbf16, #tpu.memory_space<vmem>>, vector<4x8xbf16>
    %c0_14 = arith.constant 0 : index
    %c109 = arith.constant 109 : index
    %18 = vector.load %arg12[%c0_14, %c109] : memref<20x471xbf16, #tpu.memory_space<vmem>>, vector<8x324xbf16>
    %cst_15 = arith.constant dense<0.000000e+00> : vector<4x324xf32>
    %19 = tpu.matmul %17, %18, %cst_15 {dimension_numbers = #tpu.dot_dimension_numbers<[1], [0], [0], [1], [0, 0, 1, 1], [], []>} : vector<4x8xbf16>, vector<8x324xbf16>, vector<4x324xf32> -> vector<4x324xf32>
    %20 = arith.addf %16, %19 : vector<4x324xf32>
    %c0_16 = arith.constant 0 : index
    %c8 = arith.constant 8 : index
    %21 = vector.load %arg3[%c0_16, %c8] : memref<4x72xbf16, #tpu.memory_space<vmem>>, vector<4x8xbf16>
    %c0_17 = arith.constant 0 : index
    %c110 = arith.constant 110 : index
    %22 = vector.load %arg12[%c0_17, %c110] : memref<20x471xbf16, #tpu.memory_space<vmem>>, vector<8x324xbf16>
    %cst_18 = arith.constant dense<0.000000e+00> : vector<4x324xf32>
    %23 = tpu.matmul %21, %22, %cst_18 {dimension_numbers = #tpu.dot_dimension_numbers<[1], [0], [0], [1], [0, 0, 1, 1], [], []>} : vector<4x8xbf16>, vector<8x324xbf16>, vector<4x324xf32> -> vector<4x324xf32>
    %24 = arith.addf %20, %23 : vector<4x324xf32>
    %c0_19 = arith.constant 0 : index
    %c16 = arith.constant 16 : index
    %25 = vector.load %arg3[%c0_19, %c16] : memref<4x72xbf16, #tpu.memory_space<vmem>>, vector<4x8xbf16>
    %c0_20 = arith.constant 0 : index
    %c111 = arith.constant 111 : index
    %26 = vector.load %arg12[%c0_20, %c111] : memref<20x471xbf16, #tpu.memory_space<vmem>>, vector<8x324xbf16>
    %cst_21 = arith.constant dense<0.000000e+00> : vector<4x324xf32>
    %27 = tpu.matmul %25, %26, %cst_21 {dimension_numbers = #tpu.dot_dimension_numbers<[1], [0], [0], [1], [0, 0, 1, 1], [], []>} : vector<4x8xbf16>, vector<8x324xbf16>, vector<4x324xf32> -> vector<4x324xf32>
    %28 = arith.addf %24, %27 : vector<4x324xf32>
    %c0_22 = arith.constant 0 : index
    %c24 = arith.constant 24 : index
    %29 = vector.load %arg3[%c0_22, %c24] : memref<4x72xbf16, #tpu.memory_space<vmem>>, vector<4x8xbf16>
    %c0_23 = arith.constant 0 : index
    %c127 = arith.constant 127 : index
    %30 = vector.load %arg12[%c0_23, %c127] : memref<20x471xbf16, #tpu.memory_space<vmem>>, vector<8x324xbf16>
    %cst_24 = arith.constant dense<0.000000e+00> : vector<4x324xf32>
    %31 = tpu.matmul %29, %30, %cst_24 {dimension_numbers = #tpu.dot_dimension_numbers<[1], [0], [0], [1], [0, 0, 1, 1], [], []>} : vector<4x8xbf16>, vector<8x324xbf16>, vector<4x324xf32> -> vector<4x324xf32>
    %32 = arith.addf %28, %31 : vector<4x324xf32>
    %c0_25 = arith.constant 0 : index
    %c32 = arith.constant 32 : index
    %33 = vector.load %arg3[%c0_25, %c32] : memref<4x72xbf16, #tpu.memory_space<vmem>>, vector<4x8xbf16>
    %c0_26 = arith.constant 0 : index
    %c128_27 = arith.constant 128 : index
    %34 = vector.load %arg12[%c0_26, %c128_27] : memref<20x471xbf16, #tpu.memory_space<vmem>>, vector<8x324xbf16>
    %cst_28 = arith.constant dense<0.000000e+00> : vector<4x324xf32>
    %35 = tpu.matmul %33, %34, %cst_28 {dimension_numbers = #tpu.dot_dimension_numbers<[1], [0], [0], [1], [0, 0, 1, 1], [], []>} : vector<4x8xbf16>, vector<8x324xbf16>, vector<4x324xf32> -> vector<4x324xf32>
    %36 = arith.addf %32, %35 : vector<4x324xf32>
    %c0_29 = arith.constant 0 : index
    %c40 = arith.constant 40 : index
    %37 = vector.load %arg3[%c0_29, %c40] : memref<4x72xbf16, #tpu.memory_space<vmem>>, vector<4x8xbf16>
    %c0_30 = arith.constant 0 : index
    %c129 = arith.constant 129 : index
    %38 = vector.load %arg12[%c0_30, %c129] : memref<20x471xbf16, #tpu.memory_space<vmem>>, vector<8x324xbf16>
    %cst_31 = arith.constant dense<0.000000e+00> : vector<4x324xf32>
    %39 = tpu.matmul %37, %38, %cst_31 {dimension_numbers = #tpu.dot_dimension_numbers<[1], [0], [0], [1], [0, 0, 1, 1], [], []>} : vector<4x8xbf16>, vector<8x324xbf16>, vector<4x324xf32> -> vector<4x324xf32>
    %40 = arith.addf %36, %39 : vector<4x324xf32>
    %c0_32 = arith.constant 0 : index
    %c48 = arith.constant 48 : index
    %41 = vector.load %arg3[%c0_32, %c48] : memref<4x72xbf16, #tpu.memory_space<vmem>>, vector<4x8xbf16>
    %c0_33 = arith.constant 0 : index
    %c145 = arith.constant 145 : index
    %42 = vector.load %arg12[%c0_33, %c145] : memref<20x471xbf16, #tpu.memory_space<vmem>>, vector<8x324xbf16>
    %cst_34 = arith.constant dense<0.000000e+00> : vector<4x324xf32>
    %43 = tpu.matmul %41, %42, %cst_34 {dimension_numbers = #tpu.dot_dimension_numbers<[1], [0], [0], [1], [0, 0, 1, 1], [], []>} : vector<4x8xbf16>, vector<8x324xbf16>, vector<4x324xf32> -> vector<4x324xf32>
    %44 = arith.addf %40, %43 : vector<4x324xf32>
    %c0_35 = arith.constant 0 : index
    %c56 = arith.constant 56 : index
    %45 = vector.load %arg3[%c0_35, %c56] : memref<4x72xbf16, #tpu.memory_space<vmem>>, vector<4x8xbf16>
    %c0_36 = arith.constant 0 : index
    %c146 = arith.constant 146 : index
    %46 = vector.load %arg12[%c0_36, %c146] : memref<20x471xbf16, #tpu.memory_space<vmem>>, vector<8x324xbf16>
    %cst_37 = arith.constant dense<0.000000e+00> : vector<4x324xf32>
    %47 = tpu.matmul %45, %46, %cst_37 {dimension_numbers = #tpu.dot_dimension_numbers<[1], [0], [0], [1], [0, 0, 1, 1], [], []>} : vector<4x8xbf16>, vector<8x324xbf16>, vector<4x324xf32> -> vector<4x324xf32>
    %48 = arith.addf %44, %47 : vector<4x324xf32>
    %c0_38 = arith.constant 0 : index
    %c64 = arith.constant 64 : index
    %49 = vector.load %arg3[%c0_38, %c64] : memref<4x72xbf16, #tpu.memory_space<vmem>>, vector<4x8xbf16>
    %c0_39 = arith.constant 0 : index
    %c147 = arith.constant 147 : index
    %50 = vector.load %arg12[%c0_39, %c147] : memref<20x471xbf16, #tpu.memory_space<vmem>>, vector<8x324xbf16>
    %cst_40 = arith.constant dense<0.000000e+00> : vector<4x324xf32>
    %51 = tpu.matmul %49, %50, %cst_40 {dimension_numbers = #tpu.dot_dimension_numbers<[1], [0], [0], [1], [0, 0, 1, 1], [], []>} : vector<4x8xbf16>, vector<8x324xbf16>, vector<4x324xf32> -> vector<4x324xf32>
    %52 = arith.addf %48, %51 : vector<4x324xf32>
    %c0_41 = arith.constant 0 : index
    %c0_42 = arith.constant 0 : index
    %53 = vector.load %arg4[%c0_41, %c0_42] : memref<4x1xf32, #tpu.memory_space<vmem>>, vector<4x1xf32>
    %54 = vector.broadcast %53 : vector<4x1xf32> to vector<4x324xf32>
    %55 = arith.addf %52, %54 : vector<4x324xf32>
    %cst_43 = arith.constant 5.000000e-01 : f32
    %56 = vector.broadcast %cst_43 : f32 to vector<4x324xf32>
    %57 = arith.mulf %56, %55 : vector<4x324xf32>
    %cst_44 = arith.constant 4.471500e-02 : f32
    %58 = vector.broadcast %cst_44 : f32 to vector<4x324xf32>
    %59 = arith.mulf %58, %55 : vector<4x324xf32>
    %60 = arith.mulf %59, %55 : vector<4x324xf32>
    %61 = arith.mulf %60, %55 : vector<4x324xf32>
    %62 = arith.addf %55, %61 : vector<4x324xf32>
    %cst_45 = arith.constant 0.797884583 : f32
    %63 = vector.broadcast %cst_45 : f32 to vector<4x324xf32>
    %64 = arith.mulf %63, %62 : vector<4x324xf32>
    %65 = math.tanh %64 : vector<4x324xf32>
    %cst_46 = arith.constant 1.000000e+00 : f32
    %66 = vector.broadcast %cst_46 : f32 to vector<4x324xf32>
    %67 = arith.addf %66, %65 : vector<4x324xf32>
    %68 = arith.mulf %57, %67 : vector<4x324xf32>
    %cst_47 = arith.constant 0.000000e+00 : f32
    %69 = vector.shape_cast %5 : vector<1x324xi1> to vector<1x324xi1>
    %70 = vector.broadcast %69 : vector<1x324xi1> to vector<4x324xi1>
    %71 = vector.broadcast %cst_47 : f32 to vector<4x324xf32>
    %72 = arith.select %70, %68, %71 : vector<4x324xi1>, vector<4x324xf32>
    %73 = arith.truncf %72 : vector<4x324xf32> to vector<4x324xbf16>
    %c8_48 = arith.constant 8 : index
    %c128_49 = arith.constant 128 : index
    %74 = vector.load %arg12[%c8_48, %c128_49] : memref<20x471xbf16, #tpu.memory_space<vmem>>, vector<4x324xbf16>
    tpu.vector_store %arg12[%c8_48, %c128_49], %73 {strides = array<i32>} : memref<20x471xbf16, #tpu.memory_space<vmem>>, vector<4x324xbf16>,
    %c0_50 = arith.constant 0 : index
    %c8_51 = arith.constant 8 : index
    %75 = vector.load %arg9[%c0_50, %c8_51] : memref<8x20xbf16, #tpu.memory_space<vmem>>, vector<8x4xbf16>
    %cst_52 = arith.constant dense<0.000000e+00> : vector<8x324xf32>
    %76 = tpu.matmul %75, %73, %cst_52 {dimension_numbers = #tpu.dot_dimension_numbers<[1], [0], [0], [1], [0, 0, 1, 1], [], []>} : vector<8x4xbf16>, vector<4x324xbf16>, vector<8x324xf32> -> vector<8x324xf32>
    %77 = arith.addf %15, %76 : vector<8x324xf32>
    %cst_53 = arith.constant 0.000000e+00 : f32
    %78 = vector.broadcast %cst_53 : f32 to vector<4x324xf32>
    %c0_54 = arith.constant 0 : index
    %c0_55 = arith.constant 0 : index
    %79 = vector.load %arg5[%c0_54, %c0_55] : memref<4x108xbf16, #tpu.memory_space<vmem>>, vector<4x12xbf16>
    %c0_56 = arith.constant 0 : index
    %c109_57 = arith.constant 109 : index
    %80 = vector.load %arg12[%c0_56, %c109_57] : memref<20x471xbf16, #tpu.memory_space<vmem>>, vector<12x324xbf16>
    %cst_58 = arith.constant dense<0.000000e+00> : vector<4x324xf32>
    %81 = tpu.matmul %79, %80, %cst_58 {dimension_numbers = #tpu.dot_dimension_numbers<[1], [0], [0], [1], [0, 0, 1, 1], [], []>} : vector<4x12xbf16>, vector<12x324xbf16>, vector<4x324xf32> -> vector<4x324xf32>
    %82 = arith.addf %78, %81 : vector<4x324xf32>
    %c0_59 = arith.constant 0 : index
    %c12 = arith.constant 12 : index
    %83 = vector.load %arg5[%c0_59, %c12] : memref<4x108xbf16, #tpu.memory_space<vmem>>, vector<4x12xbf16>
    %c0_60 = arith.constant 0 : index
    %c110_61 = arith.constant 110 : index
    %84 = vector.load %arg12[%c0_60, %c110_61] : memref<20x471xbf16, #tpu.memory_space<vmem>>, vector<12x324xbf16>
    %cst_62 = arith.constant dense<0.000000e+00> : vector<4x324xf32>
    %85 = tpu.matmul %83, %84, %cst_62 {dimension_numbers = #tpu.dot_dimension_numbers<[1], [0], [0], [1], [0, 0, 1, 1], [], []>} : vector<4x12xbf16>, vector<12x324xbf16>, vector<4x324xf32> -> vector<4x324xf32>
    %86 = arith.addf %82, %85 : vector<4x324xf32>
    %c0_63 = arith.constant 0 : index
    %c24_64 = arith.constant 24 : index
    %87 = vector.load %arg5[%c0_63, %c24_64] : memref<4x108xbf16, #tpu.memory_space<vmem>>, vector<4x12xbf16>
    %c0_65 = arith.constant 0 : index
    %c111_66 = arith.constant 111 : index
    %88 = vector.load %arg12[%c0_65, %c111_66] : memref<20x471xbf16, #tpu.memory_space<vmem>>, vector<12x324xbf16>
    %cst_67 = arith.constant dense<0.000000e+00> : vector<4x324xf32>
    %89 = tpu.matmul %87, %88, %cst_67 {dimension_numbers = #tpu.dot_dimension_numbers<[1], [0], [0], [1], [0, 0, 1, 1], [], []>} : vector<4x12xbf16>, vector<12x324xbf16>, vector<4x324xf32> -> vector<4x324xf32>
    %90 = arith.addf %86, %89 : vector<4x324xf32>
    %c0_68 = arith.constant 0 : index
    %c36 = arith.constant 36 : index
    %91 = vector.load %arg5[%c0_68, %c36] : memref<4x108xbf16, #tpu.memory_space<vmem>>, vector<4x12xbf16>
    %c0_69 = arith.constant 0 : index
    %c127_70 = arith.constant 127 : index
    %92 = vector.load %arg12[%c0_69, %c127_70] : memref<20x471xbf16, #tpu.memory_space<vmem>>, vector<12x324xbf16>
    %cst_71 = arith.constant dense<0.000000e+00> : vector<4x324xf32>
    %93 = tpu.matmul %91, %92, %cst_71 {dimension_numbers = #tpu.dot_dimension_numbers<[1], [0], [0], [1], [0, 0, 1, 1], [], []>} : vector<4x12xbf16>, vector<12x324xbf16>, vector<4x324xf32> -> vector<4x324xf32>
    %94 = arith.addf %90, %93 : vector<4x324xf32>
    %c0_72 = arith.constant 0 : index
    %c48_73 = arith.constant 48 : index
    %95 = vector.load %arg5[%c0_72, %c48_73] : memref<4x108xbf16, #tpu.memory_space<vmem>>, vector<4x12xbf16>
    %c0_74 = arith.constant 0 : index
    %c128_75 = arith.constant 128 : index
    %96 = vector.load %arg12[%c0_74, %c128_75] : memref<20x471xbf16, #tpu.memory_space<vmem>>, vector<12x324xbf16>
    %cst_76 = arith.constant dense<0.000000e+00> : vector<4x324xf32>
    %97 = tpu.matmul %95, %96, %cst_76 {dimension_numbers = #tpu.dot_dimension_numbers<[1], [0], [0], [1], [0, 0, 1, 1], [], []>} : vector<4x12xbf16>, vector<12x324xbf16>, vector<4x324xf32> -> vector<4x324xf32>
    %98 = arith.addf %94, %97 : vector<4x324xf32>
    %c0_77 = arith.constant 0 : index
    %c60 = arith.constant 60 : index
    %99 = vector.load %arg5[%c0_77, %c60] : memref<4x108xbf16, #tpu.memory_space<vmem>>, vector<4x12xbf16>
    %c0_78 = arith.constant 0 : index
    %c129_79 = arith.constant 129 : index
    %100 = vector.load %arg12[%c0_78, %c129_79] : memref<20x471xbf16, #tpu.memory_space<vmem>>, vector<12x324xbf16>
    %cst_80 = arith.constant dense<0.000000e+00> : vector<4x324xf32>
    %101 = tpu.matmul %99, %100, %cst_80 {dimension_numbers = #tpu.dot_dimension_numbers<[1], [0], [0], [1], [0, 0, 1, 1], [], []>} : vector<4x12xbf16>, vector<12x324xbf16>, vector<4x324xf32> -> vector<4x324xf32>
    %102 = arith.addf %98, %101 : vector<4x324xf32>
    %c0_81 = arith.constant 0 : index
    %c72 = arith.constant 72 : index
    %103 = vector.load %arg5[%c0_81, %c72] : memref<4x108xbf16, #tpu.memory_space<vmem>>, vector<4x12xbf16>
    %c0_82 = arith.constant 0 : index
    %c145_83 = arith.constant 145 : index
    %104 = vector.load %arg12[%c0_82, %c145_83] : memref<20x471xbf16, #tpu.memory_space<vmem>>, vector<12x324xbf16>
    %cst_84 = arith.constant dense<0.000000e+00> : vector<4x324xf32>
    %105 = tpu.matmul %103, %104, %cst_84 {dimension_numbers = #tpu.dot_dimension_numbers<[1], [0], [0], [1], [0, 0, 1, 1], [], []>} : vector<4x12xbf16>, vector<12x324xbf16>, vector<4x324xf32> -> vector<4x324xf32>
    %106 = arith.addf %102, %105 : vector<4x324xf32>
    %c0_85 = arith.constant 0 : index
    %c84 = arith.constant 84 : index
    %107 = vector.load %arg5[%c0_85, %c84] : memref<4x108xbf16, #tpu.memory_space<vmem>>, vector<4x12xbf16>
    %c0_86 = arith.constant 0 : index
    %c146_87 = arith.constant 146 : index
    %108 = vector.load %arg12[%c0_86, %c146_87] : memref<20x471xbf16, #tpu.memory_space<vmem>>, vector<12x324xbf16>
    %cst_88 = arith.constant dense<0.000000e+00> : vector<4x324xf32>
    %109 = tpu.matmul %107, %108, %cst_88 {dimension_numbers = #tpu.dot_dimension_numbers<[1], [0], [0], [1], [0, 0, 1, 1], [], []>} : vector<4x12xbf16>, vector<12x324xbf16>, vector<4x324xf32> -> vector<4x324xf32>
    %110 = arith.addf %106, %109 : vector<4x324xf32>
    %c0_89 = arith.constant 0 : index
    %c96 = arith.constant 96 : index
    %111 = vector.load %arg5[%c0_89, %c96] : memref<4x108xbf16, #tpu.memory_space<vmem>>, vector<4x12xbf16>
    %c0_90 = arith.constant 0 : index
    %c147_91 = arith.constant 147 : index
    %112 = vector.load %arg12[%c0_90, %c147_91] : memref<20x471xbf16, #tpu.memory_space<vmem>>, vector<12x324xbf16>
    %cst_92 = arith.constant dense<0.000000e+00> : vector<4x324xf32>
    %113 = tpu.matmul %111, %112, %cst_92 {dimension_numbers = #tpu.dot_dimension_numbers<[1], [0], [0], [1], [0, 0, 1, 1], [], []>} : vector<4x12xbf16>, vector<12x324xbf16>, vector<4x324xf32> -> vector<4x324xf32>
    %114 = arith.addf %110, %113 : vector<4x324xf32>
    %c0_93 = arith.constant 0 : index
    %c0_94 = arith.constant 0 : index
    %115 = vector.load %arg6[%c0_93, %c0_94] : memref<4x1xf32, #tpu.memory_space<vmem>>, vector<4x1xf32>
    %116 = vector.broadcast %115 : vector<4x1xf32> to vector<4x324xf32>
    %117 = arith.addf %114, %116 : vector<4x324xf32>
    %cst_95 = arith.constant 5.000000e-01 : f32
    %118 = vector.broadcast %cst_95 : f32 to vector<4x324xf32>
    %119 = arith.mulf %118, %117 : vector<4x324xf32>
    %cst_96 = arith.constant 4.471500e-02 : f32
    %120 = vector.broadcast %cst_96 : f32 to vector<4x324xf32>
    %121 = arith.mulf %120, %117 : vector<4x324xf32>
    %122 = arith.mulf %121, %117 : vector<4x324xf32>
    %123 = arith.mulf %122, %117 : vector<4x324xf32>
    %124 = arith.addf %117, %123 : vector<4x324xf32>
    %cst_97 = arith.constant 0.797884583 : f32
    %125 = vector.broadcast %cst_97 : f32 to vector<4x324xf32>
    %126 = arith.mulf %125, %124 : vector<4x324xf32>
    %127 = math.tanh %126 : vector<4x324xf32>
    %cst_98 = arith.constant 1.000000e+00 : f32
    %128 = vector.broadcast %cst_98 : f32 to vector<4x324xf32>
    %129 = arith.addf %128, %127 : vector<4x324xf32>
    %130 = arith.mulf %119, %129 : vector<4x324xf32>
    %cst_99 = arith.constant 0.000000e+00 : f32
    %131 = vector.shape_cast %5 : vector<1x324xi1> to vector<1x324xi1>
    %132 = vector.broadcast %131 : vector<1x324xi1> to vector<4x324xi1>
    %133 = vector.broadcast %cst_99 : f32 to vector<4x324xf32>
    %134 = arith.select %132, %130, %133 : vector<4x324xi1>, vector<4x324xf32>
    %135 = arith.truncf %134 : vector<4x324xf32> to vector<4x324xbf16>
    %c12_100 = arith.constant 12 : index
    %c128_101 = arith.constant 128 : index
    %136 = vector.load %arg12[%c12_100, %c128_101] : memref<20x471xbf16, #tpu.memory_space<vmem>>, vector<4x324xbf16>
    tpu.vector_store %arg12[%c12_100, %c128_101], %135 {strides = array<i32>} : memref<20x471xbf16, #tpu.memory_space<vmem>>, vector<4x324xbf16>,
    %c0_102 = arith.constant 0 : index
    %c12_103 = arith.constant 12 : index
    %137 = vector.load %arg9[%c0_102, %c12_103] : memref<8x20xbf16, #tpu.memory_space<vmem>>, vector<8x4xbf16>
    %cst_104 = arith.constant dense<0.000000e+00> : vector<8x324xf32>
    %138 = tpu.matmul %137, %135, %cst_104 {dimension_numbers = #tpu.dot_dimension_numbers<[1], [0], [0], [1], [0, 0, 1, 1], [], []>} : vector<8x4xbf16>, vector<4x324xbf16>, vector<8x324xf32> -> vector<8x324xf32>
    %139 = arith.addf %77, %138 : vector<8x324xf32>
    %cst_105 = arith.constant 0.000000e+00 : f32
    %140 = vector.broadcast %cst_105 : f32 to vector<4x324xf32>
    %c0_106 = arith.constant 0 : index
    %c0_107 = arith.constant 0 : index
    %141 = vector.load %arg7[%c0_106, %c0_107] : memref<4x144xbf16, #tpu.memory_space<vmem>>, vector<4x16xbf16>
    %c0_108 = arith.constant 0 : index
    %c109_109 = arith.constant 109 : index
    %142 = vector.load %arg12[%c0_108, %c109_109] : memref<20x471xbf16, #tpu.memory_space<vmem>>, vector<16x324xbf16>
    %cst_110 = arith.constant dense<0.000000e+00> : vector<4x324xf32>
    %143 = tpu.matmul %141, %142, %cst_110 {dimension_numbers = #tpu.dot_dimension_numbers<[1], [0], [0], [1], [0, 0, 1, 1], [], []>} : vector<4x16xbf16>, vector<16x324xbf16>, vector<4x324xf32> -> vector<4x324xf32>
    %144 = arith.addf %140, %143 : vector<4x324xf32>
    %c0_111 = arith.constant 0 : index
    %c16_112 = arith.constant 16 : index
    %145 = vector.load %arg7[%c0_111, %c16_112] : memref<4x144xbf16, #tpu.memory_space<vmem>>, vector<4x16xbf16>
    %c0_113 = arith.constant 0 : index
    %c110_114 = arith.constant 110 : index
    %146 = vector.load %arg12[%c0_113, %c110_114] : memref<20x471xbf16, #tpu.memory_space<vmem>>, vector<16x324xbf16>
    %cst_115 = arith.constant dense<0.000000e+00> : vector<4x324xf32>
    %147 = tpu.matmul %145, %146, %cst_115 {dimension_numbers = #tpu.dot_dimension_numbers<[1], [0], [0], [1], [0, 0, 1, 1], [], []>} : vector<4x16xbf16>, vector<16x324xbf16>, vector<4x324xf32> -> vector<4x324xf32>
    %148 = arith.addf %144, %147 : vector<4x324xf32>
    %c0_116 = arith.constant 0 : index
    %c32_117 = arith.constant 32 : index
    %149 = vector.load %arg7[%c0_116, %c32_117] : memref<4x144xbf16, #tpu.memory_space<vmem>>, vector<4x16xbf16>
    %c0_118 = arith.constant 0 : index
    %c111_119 = arith.constant 111 : index
    %150 = vector.load %arg12[%c0_118, %c111_119] : memref<20x471xbf16, #tpu.memory_space<vmem>>, vector<16x324xbf16>
    %cst_120 = arith.constant dense<0.000000e+00> : vector<4x324xf32>
    %151 = tpu.matmul %149, %150, %cst_120 {dimension_numbers = #tpu.dot_dimension_numbers<[1], [0], [0], [1], [0, 0, 1, 1], [], []>} : vector<4x16xbf16>, vector<16x324xbf16>, vector<4x324xf32> -> vector<4x324xf32>
    %152 = arith.addf %148, %151 : vector<4x324xf32>
    %c0_121 = arith.constant 0 : index
    %c48_122 = arith.constant 48 : index
    %153 = vector.load %arg7[%c0_121, %c48_122] : memref<4x144xbf16, #tpu.memory_space<vmem>>, vector<4x16xbf16>
    %c0_123 = arith.constant 0 : index
    %c127_124 = arith.constant 127 : index
    %154 = vector.load %arg12[%c0_123, %c127_124] : memref<20x471xbf16, #tpu.memory_space<vmem>>, vector<16x324xbf16>
    %cst_125 = arith.constant dense<0.000000e+00> : vector<4x324xf32>
    %155 = tpu.matmul %153, %154, %cst_125 {dimension_numbers = #tpu.dot_dimension_numbers<[1], [0], [0], [1], [0, 0, 1, 1], [], []>} : vector<4x16xbf16>, vector<16x324xbf16>, vector<4x324xf32> -> vector<4x324xf32>
    %156 = arith.addf %152, %155 : vector<4x324xf32>
    %c0_126 = arith.constant 0 : index
    %c64_127 = arith.constant 64 : index
    %157 = vector.load %arg7[%c0_126, %c64_127] : memref<4x144xbf16, #tpu.memory_space<vmem>>, vector<4x16xbf16>
    %c0_128 = arith.constant 0 : index
    %c128_129 = arith.constant 128 : index
    %158 = vector.load %arg12[%c0_128, %c128_129] : memref<20x471xbf16, #tpu.memory_space<vmem>>, vector<16x324xbf16>
    %cst_130 = arith.constant dense<0.000000e+00> : vector<4x324xf32>
    %159 = tpu.matmul %157, %158, %cst_130 {dimension_numbers = #tpu.dot_dimension_numbers<[1], [0], [0], [1], [0, 0, 1, 1], [], []>} : vector<4x16xbf16>, vector<16x324xbf16>, vector<4x324xf32> -> vector<4x324xf32>
    %160 = arith.addf %156, %159 : vector<4x324xf32>
    %c0_131 = arith.constant 0 : index
    %c80 = arith.constant 80 : index
    %161 = vector.load %arg7[%c0_131, %c80] : memref<4x144xbf16, #tpu.memory_space<vmem>>, vector<4x16xbf16>
    %c0_132 = arith.constant 0 : index
    %c129_133 = arith.constant 129 : index
    %162 = vector.load %arg12[%c0_132, %c129_133] : memref<20x471xbf16, #tpu.memory_space<vmem>>, vector<16x324xbf16>
    %cst_134 = arith.constant dense<0.000000e+00> : vector<4x324xf32>
    %163 = tpu.matmul %161, %162, %cst_134 {dimension_numbers = #tpu.dot_dimension_numbers<[1], [0], [0], [1], [0, 0, 1, 1], [], []>} : vector<4x16xbf16>, vector<16x324xbf16>, vector<4x324xf32> -> vector<4x324xf32>
    %164 = arith.addf %160, %163 : vector<4x324xf32>
    %c0_135 = arith.constant 0 : index
    %c96_136 = arith.constant 96 : index
    %165 = vector.load %arg7[%c0_135, %c96_136] : memref<4x144xbf16, #tpu.memory_space<vmem>>, vector<4x16xbf16>
    %c0_137 = arith.constant 0 : index
    %c145_138 = arith.constant 145 : index
    %166 = vector.load %arg12[%c0_137, %c145_138] : memref<20x471xbf16, #tpu.memory_space<vmem>>, vector<16x324xbf16>
    %cst_139 = arith.constant dense<0.000000e+00> : vector<4x324xf32>
    %167 = tpu.matmul %165, %166, %cst_139 {dimension_numbers = #tpu.dot_dimension_numbers<[1], [0], [0], [1], [0, 0, 1, 1], [], []>} : vector<4x16xbf16>, vector<16x324xbf16>, vector<4x324xf32> -> vector<4x324xf32>
    %168 = arith.addf %164, %167 : vector<4x324xf32>
    %c0_140 = arith.constant 0 : index
    %c112 = arith.constant 112 : index
    %169 = vector.load %arg7[%c0_140, %c112] : memref<4x144xbf16, #tpu.memory_space<vmem>>, vector<4x16xbf16>
    %c0_141 = arith.constant 0 : index
    %c146_142 = arith.constant 146 : index
    %170 = vector.load %arg12[%c0_141, %c146_142] : memref<20x471xbf16, #tpu.memory_space<vmem>>, vector<16x324xbf16>
    %cst_143 = arith.constant dense<0.000000e+00> : vector<4x324xf32>
    %171 = tpu.matmul %169, %170, %cst_143 {dimension_numbers = #tpu.dot_dimension_numbers<[1], [0], [0], [1], [0, 0, 1, 1], [], []>} : vector<4x16xbf16>, vector<16x324xbf16>, vector<4x324xf32> -> vector<4x324xf32>
    %172 = arith.addf %168, %171 : vector<4x324xf32>
    %c0_144 = arith.constant 0 : index
    %c128_145 = arith.constant 128 : index
    %173 = vector.load %arg7[%c0_144, %c128_145] : memref<4x144xbf16, #tpu.memory_space<vmem>>, vector<4x16xbf16>
    %c0_146 = arith.constant 0 : index
    %c147_147 = arith.constant 147 : index
    %174 = vector.load %arg12[%c0_146, %c147_147] : memref<20x471xbf16, #tpu.memory_space<vmem>>, vector<16x324xbf16>
    %cst_148 = arith.constant dense<0.000000e+00> : vector<4x324xf32>
    %175 = tpu.matmul %173, %174, %cst_148 {dimension_numbers = #tpu.dot_dimension_numbers<[1], [0], [0], [1], [0, 0, 1, 1], [], []>} : vector<4x16xbf16>, vector<16x324xbf16>, vector<4x324xf32> -> vector<4x324xf32>
    %176 = arith.addf %172, %175 : vector<4x324xf32>
    %c0_149 = arith.constant 0 : index
    %c0_150 = arith.constant 0 : index
    %177 = vector.load %arg8[%c0_149, %c0_150] : memref<4x1xf32, #tpu.memory_space<vmem>>, vector<4x1xf32>
    %178 = vector.broadcast %177 : vector<4x1xf32> to vector<4x324xf32>
    %179 = arith.addf %176, %178 : vector<4x324xf32>
    %cst_151 = arith.constant 5.000000e-01 : f32
    %180 = vector.broadcast %cst_151 : f32 to vector<4x324xf32>
    %181 = arith.mulf %180, %179 : vector<4x324xf32>
    %cst_152 = arith.constant 4.471500e-02 : f32
    %182 = vector.broadcast %cst_152 : f32 to vector<4x324xf32>
    %183 = arith.mulf %182, %179 : vector<4x324xf32>
    %184 = arith.mulf %183, %179 : vector<4x324xf32>
    %185 = arith.mulf %184, %179 : vector<4x324xf32>
    %186 = arith.addf %179, %185 : vector<4x324xf32>
    %cst_153 = arith.constant 0.797884583 : f32
    %187 = vector.broadcast %cst_153 : f32 to vector<4x324xf32>
    %188 = arith.mulf %187, %186 : vector<4x324xf32>
    %189 = math.tanh %188 : vector<4x324xf32>
    %cst_154 = arith.constant 1.000000e+00 : f32
    %190 = vector.broadcast %cst_154 : f32 to vector<4x324xf32>
    %191 = arith.addf %190, %189 : vector<4x324xf32>
    %192 = arith.mulf %181, %191 : vector<4x324xf32>
    %cst_155 = arith.constant 0.000000e+00 : f32
    %193 = vector.shape_cast %5 : vector<1x324xi1> to vector<1x324xi1>
    %194 = vector.broadcast %193 : vector<1x324xi1> to vector<4x324xi1>
    %195 = vector.broadcast %cst_155 : f32 to vector<4x324xf32>
    %196 = arith.select %194, %192, %195 : vector<4x324xi1>, vector<4x324xf32>
    %197 = arith.truncf %196 : vector<4x324xf32> to vector<4x324xbf16>
    %c16_156 = arith.constant 16 : index
    %c128_157 = arith.constant 128 : index
    %198 = vector.load %arg12[%c16_156, %c128_157] : memref<20x471xbf16, #tpu.memory_space<vmem>>, vector<4x324xbf16>
    tpu.vector_store %arg12[%c16_156, %c128_157], %197 {strides = array<i32>} : memref<20x471xbf16, #tpu.memory_space<vmem>>, vector<4x324xbf16>,
    %c0_158 = arith.constant 0 : index
    %c16_159 = arith.constant 16 : index
    %199 = vector.load %arg9[%c0_158, %c16_159] : memref<8x20xbf16, #tpu.memory_space<vmem>>, vector<8x4xbf16>
    %cst_160 = arith.constant dense<0.000000e+00> : vector<8x324xf32>
    %200 = tpu.matmul %199, %197, %cst_160 {dimension_numbers = #tpu.dot_dimension_numbers<[1], [0], [0], [1], [0, 0, 1, 1], [], []>} : vector<8x4xbf16>, vector<4x324xbf16>, vector<8x324xf32> -> vector<8x324xf32>
    %201 = arith.addf %139, %200 : vector<8x324xf32>
    %c0_161 = arith.constant 0 : index
    %c0_162 = arith.constant 0 : index
    %c0_163 = arith.constant 0 : index
    %202 = vector.load %arg11[%c0_161, %c0_162, %c0_163] : memref<1x8x324xf32, #tpu.memory_space<vmem>>, vector<1x8x324xf32>
    %203 = vector.shape_cast %202 : vector<1x8x324xf32> to vector<8x324xf32>
    %204 = vector.shape_cast %201 : vector<8x324xf32> to vector<1x8x324xf32>
    tpu.vector_store %arg11[%c0_161, %c0_162, %c0_163], %204 {strides = array<i32>} : memref<1x8x324xf32, #tpu.memory_space<vmem>>, vector<1x8x324xf32>,
    return
  }
  func.func @transform_0(%arg0: i32) -> (i32, i32, i32) {
    %c0_i32 = arith.constant 0 : i32
    %c0_i32_0 = arith.constant 0 : i32
    %c0_i32_1 = arith.constant 0 : i32
    return %arg0, %c0_i32, %c0_i32_0 : i32, i32, i32
  }
  func.func @transform_1(%arg0: i32) -> (i32, i32) {
    %c0_i32 = arith.constant 0 : i32
    %c0_i32_0 = arith.constant 0 : i32
    %c0_i32_1 = arith.constant 0 : i32
    return %c0_i32, %c0_i32_0 : i32, i32
  }
  func.func @transform_2(%arg0: i32) -> (i32, i32) {
    %c0_i32 = arith.constant 0 : i32
    %c0_i32_0 = arith.constant 0 : i32
    %c0_i32_1 = arith.constant 0 : i32
    return %c0_i32, %c0_i32_0 : i32, i32
  }
  func.func @transform_3(%arg0: i32) -> (i32, i32) {
    %c0_i32 = arith.constant 0 : i32
    %c0_i32_0 = arith.constant 0 : i32
    %c0_i32_1 = arith.constant 0 : i32
    return %c0_i32, %c0_i32_0 : i32, i32
  }
  func.func @transform_4(%arg0: i32) -> (i32, i32) {
    %c0_i32 = arith.constant 0 : i32
    %c0_i32_0 = arith.constant 0 : i32
    %c0_i32_1 = arith.constant 0 : i32
    return %c0_i32, %c0_i32_0 : i32, i32
  }
  func.func @transform_5(%arg0: i32) -> (i32, i32) {
    %c0_i32 = arith.constant 0 : i32
    %c0_i32_0 = arith.constant 0 : i32
    %c0_i32_1 = arith.constant 0 : i32
    return %c0_i32, %c0_i32_0 : i32, i32
  }
  func.func @transform_6(%arg0: i32) -> (i32, i32) {
    %c0_i32 = arith.constant 0 : i32
    %c0_i32_0 = arith.constant 0 : i32
    %c0_i32_1 = arith.constant 0 : i32
    return %c0_i32, %c0_i32_0 : i32, i32
  }
  func.func @transform_7(%arg0: i32) -> (i32, i32) {
    %c0_i32 = arith.constant 0 : i32
    %c0_i32_0 = arith.constant 0 : i32
    %c0_i32_1 = arith.constant 0 : i32
    return %c0_i32, %c0_i32_0 : i32, i32
  }
  func.func @transform_8(%arg0: i32) -> (i32, i32) {
    %c0_i32 = arith.constant 0 : i32
    %c0_i32_0 = arith.constant 0 : i32
    %c0_i32_1 = arith.constant 0 : i32
    return %c0_i32, %c0_i32_0 : i32, i32
  }
  func.func @transform_9(%arg0: i32) -> (i32, i32) {
    %c0_i32 = arith.constant 0 : i32
    %c0_i32_0 = arith.constant 0 : i32
    %c0_i32_1 = arith.constant 0 : i32
    return %c0_i32, %c0_i32_0 : i32, i32
  }
  func.func @transform_10(%arg0: i32) -> (i32, i32, i32) {
    %c0_i32 = arith.constant 0 : i32
    %c0_i32_0 = arith.constant 0 : i32
    %c0_i32_1 = arith.constant 0 : i32
    return %arg0, %c0_i32, %c0_i32_0 : i32, i32, i32
  }
}

</mosaic_0001>

<bundles_post_ra>
// kernel: tpu_custom_call.1
= control target key start
LH: loop header
LB: loop body
LE: loop exit
PB: predicated region body
PF: predicated region fallthrough
CT: control target
= control target key end

     0   :  { %15 = vsyncpa [#allocation4], 0  ;;  %s4392_s0 = inlined_call_operand.hbm [shape: f32[2,8,324], index: 0, kind: input, shape index: {}]   ;;  %s4393_s1 = inlined_call_operand.vmem [shape: f32[1,324], index: 1, kind: input, shape index: {}]   ;;  %s4394_s2 = inlined_call_operand.vmem [shape: bf16[4,72], index: 2, kind: input, shape index: {}]   ;;  %s4395_s3 = inlined_call_operand.vmem [shape: f32[4,1], index: 3, kind: input, shape index: {}]   ;;  %s4396_s4 = inlined_call_operand.vmem [shape: bf16[4,108], index: 4, kind: input, shape index: {}]   ;;  %s4397_s5 = inlined_call_operand.vmem [shape: f32[4,1], index: 5, kind: input, shape index: {}]   ;;  %s4398_s6 = inlined_call_operand.vmem [shape: bf16[4,144], index: 6, kind: input, shape index: {}]   ;;  %s4399_s7 = inlined_call_operand.vmem [shape: f32[4,1], index: 7, kind: input, shape index: {}]   ;;  %s4400_s8 = inlined_call_operand.vmem [shape: bf16[8,20], index: 8, kind: input, shape index: {}]   ;;  %s4401_s9 = inlined_call_operand.vmem [shape: f32[8,1], index: 9, kind: input, shape index: {}]   ;;  %s4402_s10 = inlined_call_operand.hbm [shape: f32[2,8,324], index: 10, kind: output, shape index: {}]  }
   0x1   :  { %17 = vsyncpa [#allocation4 + $0x1], 0 }
   0x2   :  { %18 = vsyncpa [#allocation5], 0 }
   0x3   :  { %20 = vsyncpa [#allocation5 + $0x1], 0  ;;  %s3725_s13 = smov 0   ;;  %s3727_s14 = smov 0  }
   0x4   :  { %s3729_s15 = smov 0   ;;  %s3731_s16 = smov 0  }
   0x5 LB: > { %4421 = sst [smem:[#allocation9_spill]] %s3630_s13  ;;  %s3746_s17 = sadd.s32 4294967295, %s3642_s16   ;;  %s3642_s16 = sphi %s3731_s16, %s4446_s16   ;;  %s3638_s15 = sphi %s3729_s15, %s4448_s15   ;;  %s3634_s14 = sphi %s3727_s14, %s4450_s14   ;;  %s3630_s13 = sphi %s3725_s13, %s4449_s13  }
   0x6   : > { %4422 = sst [smem:[#allocation10_spill]] %s3638_s15  ;;  %s3075_s18 = sadd.s32 4294967294, %s3642_s16  }
   0x7   : > { %s3750_s19 = sadd.s32 1, %s3642_s16   ;;  %s33_s20 = sadd.s32 1, %s3638_s15 }
   0x8   : > { %4423 = sst [smem:[#allocation11_spill]] %s3750_s19  ;;  %s30_s21 = ssub.s32 %s3642_s16, %s3750_s19 }
   0x9   : > { %p40_p0 = scmp.ne.s32.totalorder %s3638_s15, %s3634_s14  ;;  %p31_p1 = scmp.eq.s32.totalorder %s30_s21, 0 }
   0xa   : > { %p41_p2 = scmp.eq.s32.totalorder %s3642_s16, 0  ;;  %p46_p3 = scmp.ne.s32.totalorder %s3634_s14, %s3630_s13 }
   0xb   : > { %p47_p4 = scmp.eq.s32.totalorder %s3746_s17, 0  ;;  %p259_p7 = scmp.eq.s32.totalorder %s3746_s17, 1 }
   0xc   : > { %s3762_s22 = scalar_select %p31_p1, %s3638_s15, %s33_s20  }
   0xd   : > { %p42_p5 = por %p41_p2, %p40_p0  ;;  %p3764_p6 = por %p47_p4, %p46_p3 }
   0xe   : > { %4424 = sst [smem:[#allocation12_spill]] %s3762_s22  ;;  %p265_p8 = scmp.eq.s32.totalorder %s3075_s18, 1 }
   0xf   : > { %p3077_p9 = scmp.ge.s32.totalorder %s3642_s16, 2  ;;  %p3463_p10 = scmp.lt.s32.totalorder %s3642_s16, 2 }
  0x10   : > { %p3771_p11 = por %p259_p7, %p40_p0  ;;  %p3775_p12 = por %p265_p8, %p46_p3 }
  0x11   : > { %s312_s26 = sand.u32 1, %s3638_s15   ;;  %s3448_s27 = smul.u32 24, %s3642_s16 }
  0x12   : > { %s4427_s25 = scalar_select %p3775_p12, 1, 0 }
  0x13   : > { %s3447_s28 = smul.u32 24, %s312_s26  ;;  %s321_s11 = scalar_lea.hbm %s4392_s0, %s3448_s27 }
  0x14   : > { %4428 = sst [smem:[#allocation13_spill]] %s4427_s25  ;;  %p3784_p13 = pnand %p3463_p10, %p42_p5 }
  0x15   : > { %s323_s18 = sshll.u32 %s321_s11, 4  ;;  %s316_s20 = scalar_lea.vmem [#allocation3], %s3447_s28  ;;  %s324_s18 = int_to_ptr.hbm [resolvable:$true] %s323_s18 }
  0x16   : > { %s325_s21 = sshll.u32 %s316_s20, 4  ;;  %s313_s22 = scalar_lea.sflag [#allocation4], %s312_s26  ;;  %s326_s21 = int_to_ptr.vmem [resolvable:$true] %s325_s21 }
  0x17   : > { %s3546_s19 = sshra.s32 %s324_s18, 4  ;;  %p3550_p1 = pneg %p3784_p13  ;;  %s3547_s19 = int_to_ptr.hbm [resolvable:$true] %s3546_s19 }
  0x18   : > { %s3548_s15 = scalar_lea.hbm %s3547_s19, 24  ;;  %s3553_s30 = scalar_lea.hbm %s4392_s0, 48 }
  0x19   : > { %p3549_p0 = scmp.ne.s32.totalorder %s3547_s19, %s3548_s15  ;;  %p3554_p4 = scmp.lt.s32.totalorder %s3547_s19, %s4392_s0 }
  0x1a   : > { %p3555_p5 = scmp.lt.s32.totalorder %s3553_s30, %s3548_s15 }
  0x1b   : > { %p3551_p2 = pnand %p3550_p1, %p3549_p0 }
  0x1c   : > { %p3556_p7 = por %p3555_p5, %p3554_p4 }
  0x1d   : > { %p3552_p3 = pneg %p3551_p2 }
  0x1f   : > { %p3557_p8 = pnand %p3556_p7, %p3552_p3 }
  0x21   : > { %3560 = shalt.err (!%p3557_p8)
}
  0x22   : > { %3458 = dma.hbm_to_vmem [thread:$0]  (!%p3784_p13), %s324_s18, 384, %s326_s21, %s313_s22  }
  0x23   : > { %p3079_p10 = scmp.ge.s32.totalorder %s3642_s16, 1  ;;  %p330_p0 = scmp.lt.s32.totalorder %s3642_s16, 3 }
  0x25   : > { %p331_p1 = pnand %p3079_p10, %p330_p0 }
  0x26   : > { %s3801_s26 = sand.u32 (!%p331_p1), 1, %s3634_s14  }
  0x27   : > { %334 = sbr.rel (%p331_p1) target bundleno = 1381 (0x565), region = 60  ;;  %s337_s15 = scalar_lea.sflag (!%p331_p1), [#allocation4], %s3801_s26 }
  0x28   : > { %s3449_s13 = smul.u32 (!%p331_p1), 24, %s3801_s26 }
  0x2a   : > { %s3805_s19 = scalar_lea.vmem (!%p331_p1), [#allocation3], %s3449_s13 }
  0x2c   : > { %3621 = dma.done.wait (%p3764_p6), %s337_s15, 384  }
  0x2d   : > { %3623 = vsyncadd (%p3764_p6), %s337_s15, 4294966912  ;;  %s3811_s22 = scalar_lea.vmem [#allocation6], %s3449_s13  ;;  %p3080_p13 = scmp.ne.s32.totalorder %s3746_s17, 0 }
  0x2f   : > { %382 = sbr.rel (%p3080_p13) target bundleno = 57 (0x39), region = 68 }
  0x34   : > { %vm384_vm0 = vcmask 1043456   ;;  %vm385_vm1 = vcmask 711684   ;;  %v3644_v0 = vmov 0  }
  0x35   : > { %383 = vst [vmem:[#allocation2] sm:$0xff] %v3644_v0  ;;  %vm386_vm2 = vmor %vm385_vm1, %vm384_vm0 }
  0x36   : > { %388 = vst [vmem:[#allocation2 + $0x10] sm:$0xff] %v3644_v0 }
  0x37   : > { %387 = vst.msk [vmem:[#allocation2 + $0x8] sm:$0xff] %vm386_vm2, %v3644_v0 }
  0x38   : > { %389 = vst.msk [vmem:[#allocation2 + $0x18] sm:$0xff] %vm386_vm2, %v3644_v0 }
  0x39 PF: > { %v3817_v1 = vld [vmem:[%s4394_s2] sm:$0x3]  ;;  %v397_v2 = vld [vmem:[%s3805_s19] sm:$0xff]  ;;  %vm403_vm3 = vcmask 551936   ;;  %s3645_s12 = smov 120   ;;  %s3646_s21 = smov 18  }
  0x3a   : > { %v398_v3 = vld [vmem:[%s3805_s19 + $0x8] sm:$0xff]  ;;  %480 = vst [vmem:[#allocation1] ss:$4 sm:$0xff] %v3817_v1  ;;  %v399_v5 = vld [vmem:[%s3805_s19 + $0x10] sm:$0xff]  ;;  %s4414_s27 = smov 19   ;;  %s3648_s13 = smov 17  }
  0x3b   : > { %v3822_v4 = vpack.c.bf16 %v398_v3, %v397_v2  ;;  %v3825_v6 = vpack.c.bf16 %v399_v5, %v399_v5  ;;  %v620_v7 = vld [vmem:[%s4394_s2] sm:$0x3]  ;;  %s4409_s28 = smov 112   ;;  %s3650_s23 = smov 1   ;;  %vm424_vm4 = vcmask 1043456   ;;  %vm420_vm5 = vcmask 64512  }
  0x3c   : > { %v705_v17 = vld [vmem:[%s4394_s2] sm:$0x3]  ;;  %s3651_s20 = smov 104   ;;  %s4408_s15 = smov 96   ;;  %vm566_vm6 = vcmask 154624   ;;  %vm503_vm7 = vcmask 146432  }
  0x3d   : > { %402 = vst [vmem:[#allocation2 + $0x4] sm:$0xff] %v3822_v4  ;;  %v790_v22 = vld [vmem:[%s4394_s2] sm:$0x3]  ;;  %v873_v28 = vunpack.c.h.b16 %v3822_v4  ;;  %s3653_s25 = smov 127   ;;  %s3654_s11 = smov 88   ;;  %v952_v33 = vunpack.c.l.b16 %v3822_v4  ;;  %v416_v39 = vunpack.c.l.b16 %v3825_v6  ;;  %vm647_vm8 = vcmask 138240  }
  0x3e   : > { %404 = vst.msk [vmem:[#allocation2 + $0xc] sm:$0xf] %vm403_vm3, %v3825_v6  ;;  %v861_v24 = vld [vmem:[%s4394_s2] sm:$0x3]  ;;  %s4419_s18 = smov 111   ;;  %s4416_s29 = smov 110  }
  0x3f   : > { %v941_v26 = vld [vmem:[%s4394_s2] sm:$0x3]  ;;  %v876_v30 = vpack.c.b16 %v873_v28, %v873_v28  ;;  %v955_v36 = vpack.c.b16 %v952_v33, %v952_v33  ;;  %v419_v43 = vpack.c.b16 %v416_v39, %v416_v39  ;;  %s3657_s30 = smov 80   ;;  %vm732_vm9 = vcmask 7168  }
  0x40   : > { %v1021_v29 = vld [vmem:[%s4394_s2] sm:$0x3]  ;;  %vm884_vm10 = vcmask 1039360   ;;  %vm964_vm11 = vcmask 908288   ;;  %vm1044_vm12 = vcmask 900096   ;;  %vm1124_vm13 = vcmask 891904  }
  0x41   : > { %v481_v8 = vld.sshfl [vmem:[#allocation1] sm:$0xff pattern:$0x73625140]  ;;  %v3878_v41 = vsel %vm424_vm4, %v955_v36, 0  ;;  %v432_v45 = vsel %vm424_vm4, %v419_v43, 0  ;;  %v3896_v49 = vsel %vm424_vm4, %v876_v30, 0 }
  0x42   : > { %483 = vrot.lane.b32.xlu1 %v481_v8, %s3645_s12  ;;  %624 = vst [vmem:[#allocation1] ss:$4 sm:$0xff] %v620_v7  ;;  %v1101_v40 = vld [vmem:[%s4394_s2] sm:$0x3]  ;;  %441 = vmatpush.bf16.msra.mxu0 %v3878_v41  ;;  %vm1230_vm2 = vcmask 549888   ;;  %vm1250_vm3 = vcmask 1041408  }
  0x43   : > { %v405_v44 = vld [vmem:[%s4400_s8] sm:$0xf]  ;;  %467 = vmatpush.bf16.msra.mxu2 %v432_v45  ;;  %454 = vmatpush.bf16.msra.mxu1 %v3896_v49 }
  0x44   : > { %v477_v9 = vld [vmem:[#allocation2] sm:$0xff] }
  0x45   : > { %v487_v10 = vunpack.c.l.b16 %v477_v9  ;;  %v488_v11 = vunpack.c.h.b16 %v477_v9  ;;  %v478_v12 = vld [vmem:[#allocation2 + $0x8] sm:$0xff]  ;;  %3081 = vmatmul.msk.bf16.vlgmr.msra.gmra.mxu0 %vm420_vm5, %v405_v44 }
  0x46   : > { %v489_v13 = vunpack.c.l.b16 %v478_v12  ;;  %v490_v19 = vunpack.c.h.b16 %v478_v12  ;;  %v863_v31 = vld [vmem:[#allocation2 + $0xc] sm:$0xf]  ;;  %3083 = vmatmul.msk.bf16.vlgmr.msra.gmra.mxu2 %vm420_vm5, %v405_v44  ;;  %3082 = vmatmul.msk.bf16.vlgmr.msra.gmra.mxu1 %vm420_vm5, %v405_v44 }
  0x47   : > { %v491_v14 = vpack.c.b16 %v487_v10, %v487_v10  ;;  %v492_v15 = vpack.c.b16 %v488_v11, %v488_v11  ;;  %v874_v32 = vunpack.c.l.b16 %v863_v31  ;;  %v943_v35 = vld [vmem:[#allocation2 + $0xc] sm:$0xf] }
  0x48   : > { %v493_v16 = vpack.c.b16 %v489_v13, %v489_v13  ;;  %v494_v20 = vpack.c.b16 %v490_v19, %v490_v19  ;;  %v954_v37 = vunpack.c.l.b16 %v943_v35  ;;  %v1023_v46 = vld [vmem:[#allocation2 + $0xc] sm:$0xf] }
  0x49   : > { %495 = vrot.lane.b32.xlu0 %v491_v14, %s3646_s21  ;;  %560 = vrot.lane.b32.xlu2 %v492_v15, %s4414_s27  ;;  %v625_v18 = vld.sshfl [vmem:[#allocation1] sm:$0xff pattern:$0x73625140]  ;;  %v877_v34 = vpack.c.b16 %v874_v32, %v874_v32  ;;  %v1034_v48 = vunpack.c.l.b16 %v1023_v46  ;;  %v1103_v51 = vld [vmem:[#allocation2 + $0xc] sm:$0xf] }
  0x4a   : > { %499 = vrot.lane.b32.xlu1 %v493_v16, %s3646_s21  ;;  %709 = vst [vmem:[#allocation1] ss:$4 sm:$0xff] %v705_v17  ;;  %v957_v42 = vpack.c.b16 %v954_v37, %v954_v37  ;;  %v1114_v53 = vunpack.c.l.b16 %v1103_v51 }
  0x4b   : > { %v1037_v50 = vpack.c.b16 %v1034_v48, %v1034_v48 }
  0x4c   : > { %v1117_v54 = vpack.c.b16 %v1114_v53, %v1114_v53 }
  0x51   : > { %497 = vrot.lane.b32.xlu0 %v492_v15, %s3646_s21  ;;  %562 = vrot.lane.b32.xlu2 %v493_v16, %s4414_s27  ;;  %v710_v21 = vld.sshfl [vmem:[#allocation1] sm:$0xff pattern:$0x73625140] }
  0x52   : > { %564 = vrot.lane.b32.xlu1 %v494_v20, %s4414_s27  ;;  %794 = vst [vmem:[#allocation1] ss:$4 sm:$0xff] %v790_v22 }
  0x59   : > { %501 = vrot.lane.b32.xlu0 %v494_v20, %s3646_s21  ;;  %558 = vrot.lane.b32.xlu2 %v491_v14, %s4414_s27  ;;  %v795_v23 = vld.sshfl [vmem:[#allocation1] sm:$0xff pattern:$0x73625140] }
  0x5a   : > { %645 = vrot.lane.b32.xlu1 %v494_v20, %s3648_s13  ;;  %865 = vst [vmem:[#allocation1] ss:$4 sm:$0xff] %v861_v24 }
  0x61   : > { %643 = vrot.lane.b32.xlu0 %v493_v16, %s3648_s13  ;;  %639 = vrot.lane.b32.xlu2 %v491_v14, %s3648_s13  ;;  %v866_v25 = vld.sshfl [vmem:[#allocation1] sm:$0xff pattern:$0x73625140] }
  0x62   : > { %627 = vrot.lane.b32.xlu1 %v625_v18, %s4409_s28  ;;  %945 = vst [vmem:[#allocation1] ss:$4 sm:$0xff] %v941_v26  ;;  %s4411_s28 = smov 64  }
  0x69   : > { %641 = vrot.lane.b32.xlu0 %v492_v15, %s3648_s13  ;;  %724 = vrot.lane.b32.xlu2 %v491_v14, %s3650_s23  ;;  %v946_v27 = vld.sshfl [vmem:[#allocation1] sm:$0xff pattern:$0x73625140] }
  0x6a   : > { %712 = vrot.lane.b32.xlu1 %v710_v21, %s3651_s20  ;;  %1025 = vst [vmem:[#allocation1] ss:$4 sm:$0xff] %v1021_v29  ;;  %v792_v21 = vld [vmem:[#allocation2 + $0xc] sm:$0xf] }
  0x6b   : > { %v803_v26 = vunpack.c.l.b16 %v792_v21 }
  0x71   : > { %726 = vrot.lane.b32.xlu0 %v492_v15, %s3650_s23  ;;  %728 = vrot.lane.b32.xlu2 %v493_v16, %s3650_s23  ;;  %v1026_v38 = vld.sshfl [vmem:[#allocation1] sm:$0xff pattern:$0x73625140] }
  0x72   : > { %730 = vrot.lane.b32.xlu1 %v494_v20, %s3650_s23  ;;  %1105 = vst [vmem:[#allocation1] ss:$4 sm:$0xff] %v1101_v40 }
  0x79   : > { %797 = vrot.lane.b32.xlu0 %v795_v23, %s4408_s15  ;;  %880 = vrot.lane.b32.xlu2 %v876_v30, %s3653_s25  ;;  %s4412_s15 = smov 109   ;;  %v1106_v47 = vld.sshfl [vmem:[#allocation1] sm:$0xff pattern:$0x73625140] }
  0x7a   : > { %868 = vrot.lane.b32.xlu1 %v866_v25, %s3654_s11  ;;  %s3659_s11 = smov 72  }
  0x81   : > { %882 = vrot.lane.b32.xlu0 %v877_v34, %s3653_s25  ;;  %878 = vrot.lane.b32.xlu2 %v955_v36, %s3653_s25 }
  0x82   : > { %958 = vrot.lane.b32.xlu1 %v955_v36, %s4419_s18 }
  0x89   : > { %962 = vrot.lane.b32.xlu0 %v957_v42, %s4419_s18  ;;  %960 = vrot.lane.b32.xlu2 %v876_v30, %s4419_s18 }
  0x8a   : > { %1038 = vrot.lane.b32.xlu1 %v955_v36, %s4416_s29 }
  0x91   : > { %948 = vrot.lane.b32.xlu0 %v946_v27, %s3657_s30  ;;  %1040 = vrot.lane.b32.xlu2 %v876_v30, %s4416_s29 }
  0x92   : > { %1118 = vrot.lane.b32.xlu1 %v955_v36, %s4412_s15 }
  0x99   : > { %1028 = vrot.lane.b32.xlu0 %v1026_v38, %s3659_s11  ;;  %1120 = vrot.lane.b32.xlu2 %v876_v30, %s4412_s15  ;;  %v806_v30 = vpack.c.b16 %v803_v26, %v803_v26  ;;  %s3663_s11 = smov 92  }
  0x9a   : > { %1108 = vrot.lane.b32.xlu1 %v1106_v47, %s4411_s28  ;;  %s4442_s28 = smov 32  }
  0x9b   : > { %v817_v35 = vsel %vm424_vm4, %v806_v30, 0 }
  0xa1   : > { %1042 = vrot.lane.b32.xlu0 %v1037_v50, %s4416_s29  ;;  %1122 = vrot.lane.b32.xlu2 %v1117_v54, %s4412_s15  ;;  %s3666_s15 = smov 44  }
  0xa3   : > { %v561_v52 = vpop.permute.xlu2 %560 }
  0xab   : > { %v563_v55 = vpop.permute.xlu2 %562 }
  0xac   : > { %v568_v63 = vsel %vm566_vm6, %v561_v52, %v563_v55 }
  0xad   : > { %v576_v5 = vsel %vm424_vm4, %v568_v63, 0 }
  0xb3   : > { %v559_v56 = vpop.permute.xlu2 %558 }
  0xb4   : > { %v567_v57 = vsel %vm566_vm6, %v559_v56, %v561_v52  ;;  %v484_v58 = vpop.permute.xlu1 %483 }
  0xb5   : > { %v573_v59 = vsel %vm424_vm4, %v567_v57, 0 }
  0xb6   : > { %588 = vmatpush.bf16.msrb.mxu2 %v573_v59 }
  0xb9   : > { %3087 = vmatmul.msk.bf16.vlgmr.msrb.gmra.mxu2 %vm420_vm5, %v3817_v1 }
  0xbb   : > { %v496_v60 = vpop.permute.xlu0 %495  ;;  %v640_v61 = vpop.permute.xlu2 %639 }
  0xbc   : > { %v500_v62 = vpop.permute.xlu1 %499 }
  0xc3   : > { %v498_v0 = vpop.permute.xlu0 %497  ;;  %v725_v2 = vpop.permute.xlu2 %724 }
  0xc4   : > { %v504_v3 = vsel %vm503_vm7, %v496_v60, %v498_v0  ;;  %v505_v4 = vsel %vm503_vm7, %v498_v0, %v500_v62  ;;  %v565_v8 = vpop.permute.xlu1 %564 }
  0xc5   : > { %v511_v6 = vsel %vm424_vm4, %v504_v3, 0  ;;  %v514_v7 = vsel %vm424_vm4, %v505_v4, 0  ;;  %v569_v9 = vsel %vm566_vm6, %v563_v55, %v565_v8  ;;  %v3661_v8 = vmov 0  }
  0xc6   : > { %526 = vmatpush.bf16.msra.mxu3 %v511_v6  ;;  %539 = vmatpush.bf16.msrb.mxu0 %v514_v7  ;;  %v579_v10 = vsel %vm424_vm4, %v569_v9, 0  ;;  %v1181_v6 = vld [vmem:[%s4395_s3] sm:$0xf] }
  0xc7   : > { %3523 = vset.pattern.permute.xlu0 %v3661_v8  ;;  %3524 = vset.pattern.permute.xlu1 %v3661_v8 }
  0xc8   : > { %1184 = vperm.xlu0 %3523, %v1181_v6  }
  0xc9   : > { %3084 = vmatmul.msk.bf16.vlgmr.msra.gmra.mxu3 %vm420_vm5, %v484_v58  ;;  %3085 = vmatmul.msk.bf16.vlgmr.msrb.gmra.mxu0 %vm420_vm5, %v484_v58  ;;  %v3973_v7 = vpop.f32.mrf.mxu2 }
  0xca   : > { %601 = vmatpush.bf16.msrb.mxu3 %v576_v5  ;;  %614 = vmatpush.bf16.msra.mxu0 %v579_v10  ;;  %v3968_v5 = vpop.f32.mrf.mxu0 }
  0xcb   : > { %v502_v11 = vpop.permute.xlu0 %501  ;;  %v729_v12 = vpop.permute.xlu2 %728 }
  0xcc   : > { %v506_v13 = vsel %vm503_vm7, %v500_v62, %v502_v11  ;;  %v646_v15 = vpop.permute.xlu1 %645 }
  0xcd   : > { %v517_v14 = vsel %vm424_vm4, %v506_v13, 0 }
  0xce   : > { %552 = vmatpush.bf16.msrb.mxu1 %v517_v14 }
  0xd1   : > { %3086 = vmatmul.msk.bf16.vlgmr.msrb.gmra.mxu1 %vm420_vm5, %v484_v58 }
  0xd2   : > { %v445_v14 = vpop.f32.mrf.mxu0 }
  0xd3   : > { %v644_v16 = vpop.permute.xlu0 %643  ;;  %v881_v17 = vpop.permute.xlu2 %880 }
  0xd4   : > { %v650_v18 = vsel %vm647_vm8, %v644_v16, %v646_v15  ;;  %v628_v20 = vpop.permute.xlu1 %627  ;;  %v471_v15 = vpop.f32.mrf.mxu2 }
  0xd5   : > { %v661_v19 = vsel %vm424_vm4, %v650_v18, 0 }
  0xd6   : > { %696 = vmatpush.bf16.msra.mxu3 %v661_v19 }
  0xd9   : > { %3088 = vmatmul.msk.bf16.vlgmr.msrb.gmra.mxu3 %vm420_vm5, %v3817_v1  ;;  %3089 = vmatmul.msk.bf16.vlgmr.msra.gmra.mxu0 %vm420_vm5, %v3817_v1 }
  0xda   : > { %826 = vmatpush.bf16.msrb.mxu3 %v3878_v41 }
  0xdb   : > { %v642_v22 = vpop.permute.xlu0 %641  ;;  %v879_v23 = vpop.permute.xlu2 %878 }
  0xdc   : > { %v648_v24 = vsel %vm647_vm8, %v640_v61, %v642_v22  ;;  %v649_v25 = vsel %vm647_vm8, %v642_v22, %v644_v16  ;;  %v713_v29 = vpop.permute.xlu1 %712  ;;  %v885_v34 = vsel %vm884_vm10, %v879_v23, %v881_v17  ;;  %v3983_v16 = vpop.f32.mrf.mxu1 }
  0xdd   : > { %v655_v27 = vsel %vm424_vm4, %v648_v24, 0  ;;  %v658_v28 = vsel %vm424_vm4, %v649_v25, 0  ;;  %v891_v41 = vsel %vm424_vm4, %v885_v34, 0 }
  0xde   : > { %670 = vmatpush.bf16.msra.mxu1 %v655_v27  ;;  %683 = vmatpush.bf16.msra.mxu2 %v658_v28 }
  0xe1   : > { %3090 = vmatmul.msk.bf16.vlgmr.msra.gmra.mxu1 %vm420_vm5, %v628_v20  ;;  %3091 = vmatmul.msk.bf16.vlgmr.msra.gmra.mxu2 %vm420_vm5, %v628_v20 }
  0xe3   : > { %v727_v1 = vpop.permute.xlu0 %726  ;;  %v961_v31 = vpop.permute.xlu2 %960 }
  0xe4   : > { %v733_v32 = vsel %vm732_vm9, %v725_v2, %v727_v1  ;;  %v734_v33 = vsel %vm732_vm9, %v727_v1, %v729_v12  ;;  %v731_v38 = vpop.permute.xlu1 %730 }
  0xe5   : > { %v740_v36 = vsel %vm424_vm4, %v733_v32, 0  ;;  %v743_v37 = vsel %vm424_vm4, %v734_v33, 0  ;;  %v735_v39 = vsel %vm732_vm9, %v729_v12, %v731_v38 }
  0xe6   : > { %755 = vmatpush.bf16.msrb.mxu0 %v740_v36  ;;  %768 = vmatpush.bf16.msrb.mxu1 %v743_v37  ;;  %v746_v40 = vsel %vm424_vm4, %v735_v39, 0 }
  0xe7   : > { %781 = vmatpush.bf16.msrb.mxu2 %v746_v40 }
  0xe9   : > { %3092 = vmatmul.msk.bf16.vlgmr.msra.gmra.mxu3 %vm420_vm5, %v628_v20  ;;  %3093 = vmatmul.msk.bf16.vlgmr.msrb.gmra.mxu0 %vm420_vm5, %v713_v29 }
  0xea   : > { %839 = vmatpush.bf16.msra.mxu0 %v3896_v49  ;;  %852 = vmatpush.bf16.msra.mxu1 %v817_v35 }
  0xeb   : > { %906 = vmatpush.bf16.msra.mxu2 %v891_v41  ;;  %v798_v42 = vpop.permute.xlu0 %797  ;;  %v1041_v44 = vpop.permute.xlu2 %1040 }
  0xec   : > { %v869_v43 = vpop.permute.xlu1 %868 }
  0xf1   : > { %3094 = vmatmul.msk.bf16.vlgmr.msrb.gmra.mxu1 %vm420_vm5, %v713_v29  ;;  %3095 = vmatmul.msk.bf16.vlgmr.msrb.gmra.mxu2 %vm420_vm5, %v713_v29 }
  0xf3   : > { %v883_v45 = vpop.permute.xlu0 %882  ;;  %v1121_v52 = vpop.permute.xlu2 %1120 }
  0xf4   : > { %v886_v46 = vsel %vm884_vm10, %v881_v17, %v883_v45  ;;  %v897_v47 = vsel %vm424_vm4, %v883_v45, 0  ;;  %v959_v49 = vpop.permute.xlu1 %958  ;;  %v458_v17 = vpop.f32.mrf.mxu1 }
  0xf5   : > { %v894_v48 = vsel %vm424_vm4, %v886_v46, 0  ;;  %932 = vmatpush.bf16.msrb.mxu0 %v897_v47  ;;  %v965_v50 = vsel %vm964_vm11, %v959_v49, %v961_v31 }
  0xf6   : > { %919 = vmatpush.bf16.msra.mxu3 %v894_v48  ;;  %v971_v51 = vsel %vm424_vm4, %v965_v50, 0 }
  0xf7   : > { %986 = vmatpush.bf16.msrb.mxu1 %v971_v51 }
  0xf9   : > { %3096 = vmatmul.msk.bf16.vlgmr.msrb.gmra.mxu3 %vm420_vm5, %v798_v42  ;;  %3097 = vmatmul.msk.bf16.vlgmr.msra.gmra.mxu0 %vm420_vm5, %v798_v42 }
  0xfb   : > { %v963_v53 = vpop.permute.xlu0 %962  ;;  %v1123_v60 = vpop.permute.xlu2 %1122 }
  0xfc   : > { %v977_v54 = vsel %vm424_vm4, %v963_v53, 0  ;;  %v966_v55 = vsel %vm964_vm11, %v961_v31, %v963_v53  ;;  %v1039_v57 = vpop.permute.xlu1 %1038  ;;  %v1126_v62 = vsel %vm1124_vm13, %v1121_v52, %v1123_v60  ;;  %v1137_v12 = vsel %vm424_vm4, %v1123_v60, 0 }
  0xfd   : > { %v974_v56 = vsel %vm424_vm4, %v966_v55, 0  ;;  %1012 = vmatpush.bf16.msrb.mxu3 %v977_v54  ;;  %v1045_v58 = vsel %vm1044_vm12, %v1039_v57, %v1041_v44  ;;  %v1134_v3 = vsel %vm424_vm4, %v1126_v62, 0  ;;  %v3116_v62 = vld [vmem:[#allocation2] sm:$0xf] }
  0xfe   : > { %999 = vmatpush.bf16.msrb.mxu2 %v974_v56  ;;  %v1051_v59 = vsel %vm424_vm4, %v1045_v58, 0 }
  0xff   : > { %1066 = vmatpush.bf16.msra.mxu0 %v1051_v59 }
 0x101   : > { %3098 = vmatmul.msk.bf16.vlgmr.msra.gmra.mxu1 %vm420_vm5, %v798_v42  ;;  %3099 = vmatmul.msk.bf16.vlgmr.msra.gmra.mxu2 %vm420_vm5, %v869_v43 }
 0x103   : > { %v949_v61 = vpop.permute.xlu0 %948 }
 0x104   : > { %v1119_v63 = vpop.permute.xlu1 %1118 }
 0x105   : > { %v1125_v0 = vsel %vm1124_vm13, %v1119_v63, %v1121_v52  ;;  %v3395_v63 = vld [vmem:[#allocation2 + $0xc] sm:$0x30] }
 0x106   : > { %v1131_v2 = vsel %vm424_vm4, %v1125_v0, 0  ;;  %v3990_v0 = vor.u32 %v3395_v63, %v3116_v62 }
 0x108   : > { %1329 = vrot.lane.b32.xlu0 %v3990_v0, %s3646_s21 }
 0x109   : > { %3100 = vmatmul.msk.bf16.vlgmr.msra.gmra.mxu3 %vm420_vm5, %v869_v43  ;;  %3101 = vmatmul.msk.bf16.vlgmr.msrb.gmra.mxu0 %vm420_vm5, %v869_v43 }
 0x10a   : > { %1146 = vmatpush.bf16.msra.mxu3 %v1131_v2  ;;  %1159 = vmatpush.bf16.msrb.mxu0 %v1134_v3  ;;  %v1232_v3 = vld [vmem:[%s4400_s8] sm:$0xf] }
 0x10b   : > { %v1029_v4 = vpop.permute.xlu0 %1028 }
 0x10c   : > { %v1109_v18 = vpop.permute.xlu1 %1108 }
 0x111   : > { %3102 = vmatmul.msk.bf16.vlgmr.msrb.gmra.mxu1 %vm420_vm5, %v949_v61  ;;  %3103 = vmatmul.msk.bf16.vlgmr.msrb.gmra.mxu2 %vm420_vm5, %v949_v61 }
 0x113   : > { %v1043_v9 = vpop.permute.xlu0 %1042 }
 0x114   : > { %v1046_v10 = vsel %vm1044_vm12, %v1041_v44, %v1043_v9  ;;  %v1057_v11 = vsel %vm424_vm4, %v1043_v9, 0  ;;  %v1234_v9 = vunpack.c.l.b16 %v1232_v3 }
 0x115   : > { %v1054_v13 = vsel %vm424_vm4, %v1046_v10, 0  ;;  %1092 = vmatpush.bf16.msra.mxu2 %v1057_v11  ;;  %vm1246_vm4 = vcmask 31744  }
 0x116   : > { %1079 = vmatpush.bf16.msra.mxu1 %v1054_v13  ;;  %v1235_v13 = vpack.c.b16 %v1234_v9, %v1234_v9 }
 0x118   : > { %1236 = vrot.lane.b32.xlu1 %v1235_v13, %s3645_s12  ;;  %s3662_s12 = smov 116  }
 0x119   : > { %3104 = vmatmul.msk.bf16.vlgmr.msrb.gmra.mxu3 %vm420_vm5, %v949_v61  ;;  %3105 = vmatmul.msk.bf16.vlgmr.msra.gmra.mxu0 %vm420_vm5, %v1029_v4 }
 0x11a   : > { %1172 = vmatpush.bf16.msrb.mxu1 %v1137_v12 }
 0x121   : > { %3106 = vmatmul.msk.bf16.vlgmr.msra.gmra.mxu1 %vm420_vm5, %v1029_v4  ;;  %3107 = vmatmul.msk.bf16.vlgmr.msra.gmra.mxu2 %vm420_vm5, %v1029_v4 }
 0x129   : > { %3108 = vmatmul.msk.bf16.vlgmr.msra.gmra.mxu3 %vm420_vm5, %v1109_v18  ;;  %3109 = vmatmul.msk.bf16.vlgmr.msrb.gmra.mxu0 %vm420_vm5, %v1109_v18 }
 0x131   : > { %3110 = vmatmul.msk.bf16.vlgmr.msrb.gmra.mxu1 %vm420_vm5, %v1109_v18  ;;  %vm1344_vm5 = vcmask 1045504  }
 0x13c   : > { %v590_v19 = vpop.f32.mrf.mxu2 }
 0x144   : > { %v592_v20 = vpop.f32.mrf.mxu2 }
 0x146   : > { %v541_v21 = vpop.f32.mrf.mxu0 }
 0x14c   : > { %v528_v22 = vpop.f32.mrf.mxu3 }
 0x14d   : > { %v591_v23 = vadd.f32 %v590_v19, %v528_v22 }
 0x14e   : > { %v543_v24 = vpop.f32.mrf.mxu0  ;;  %v554_v25 = vpop.f32.mrf.mxu1 }
 0x154   : > { %v530_v26 = vpop.f32.mrf.mxu3 }
 0x156   : > { %v556_v27 = vpop.f32.mrf.mxu1  ;;  %v616_v28 = vpop.f32.mrf.mxu0 }
 0x157   : > { %v617_v29 = vadd.f32 %v616_v28, %v554_v25  ;;  %v1185_v25 = vpop.permute.xlu0 %1184 }
 0x15c   : > { %v603_v30 = vpop.f32.mrf.mxu3 }
 0x15d   : > { %v604_v1 = vadd.f32 %v603_v30, %v541_v21 }
 0x15e   : > { %v618_v31 = vpop.f32.mrf.mxu0  ;;  %v672_v32 = vpop.f32.mrf.mxu1 }
 0x15f   : > { %v702_v33 = vadd.f32 %v672_v32, %v591_v23 }
 0x164   : > { %v605_v34 = vpop.f32.mrf.mxu3  ;;  %v685_v35 = vpop.f32.mrf.mxu2 }
 0x165   : > { %v703_v2 = vadd.f32 %v685_v35, %v604_v1 }
 0x166   : > { %v674_v36 = vpop.f32.mrf.mxu1  ;;  %v757_v37 = vpop.f32.mrf.mxu0 }
 0x167   : > { %v787_v17 = vadd.f32 %v757_v37, %v702_v33 }
 0x16c   : > { %v687_v38 = vpop.f32.mrf.mxu2  ;;  %v698_v39 = vpop.f32.mrf.mxu3 }
 0x16d   : > { %v704_v18 = vadd.f32 %v698_v39, %v617_v29 }
 0x16e   : > { %v759_v40 = vpop.f32.mrf.mxu0  ;;  %v770_v41 = vpop.f32.mrf.mxu1 }
 0x16f   : > { %v788_v10 = vadd.f32 %v770_v41, %v703_v2 }
 0x174   : > { %v700_v42 = vpop.f32.mrf.mxu3  ;;  %v783_v43 = vpop.f32.mrf.mxu2 }
 0x175   : > { %v789_v22 = vadd.f32 %v783_v43, %v704_v18 }
 0x176   : > { %v772_v44 = vpop.f32.mrf.mxu1  ;;  %v841_v45 = vpop.f32.mrf.mxu0 }
 0x177   : > { %v859_v14 = vadd.f32 %v841_v45, %v788_v10 }
 0x17c   : > { %v785_v46 = vpop.f32.mrf.mxu2  ;;  %v828_v47 = vpop.f32.mrf.mxu3 }
 0x17d   : > { %v858_v23 = vadd.f32 %v828_v47, %v787_v17 }
 0x17e   : > { %v843_v48 = vpop.f32.mrf.mxu0  ;;  %v854_v49 = vpop.f32.mrf.mxu1 }
 0x17f   : > { %v860_v28 = vadd.f32 %v854_v49, %v789_v22  ;;  %v4001_v49 = vld [vmem:[%s4396_s4] sm:$0x3] }
 0x180   : > { %1308 = vst [vmem:[#allocation1] ss:$4 sm:$0xff] %v4001_v49 }
 0x184   : > { %v830_v50 = vpop.f32.mrf.mxu3  ;;  %v908_v51 = vpop.f32.mrf.mxu2 }
 0x185   : > { %v938_v30 = vadd.f32 %v908_v51, %v858_v23 }
 0x186   : > { %v856_v52 = vpop.f32.mrf.mxu1  ;;  %v934_v53 = vpop.f32.mrf.mxu0 }
 0x187   : > { %v940_v31 = vadd.f32 %v934_v53, %v860_v28  ;;  %v4008_v3 = vld.sshfl [vmem:[#allocation1] sm:$0xff pattern:$0x73625140] }
 0x18c   : > { %v910_v54 = vpop.f32.mrf.mxu2  ;;  %v921_v55 = vpop.f32.mrf.mxu3 }
 0x18d   : > { %v939_v15 = vadd.f32 %v921_v55, %v859_v14 }
 0x18e   : > { %v936_v56 = vpop.f32.mrf.mxu0  ;;  %v988_v57 = vpop.f32.mrf.mxu1 }
 0x18f   : > { %v1018_v32 = vadd.f32 %v988_v57, %v938_v30  ;;  %v395_v56 = vld [vmem:[%s4393_s1] sm:$0x7] }
 0x190   : > { %vm396_vm14 = vcmp.gt.f32.partialorder %v395_v56, 0.5 }
 0x191   : > { %v1217_v2 = vsel %vm396_vm14, 1, %v3661_v8  ;;  %vm1340_vm14 = vcmask 97280  }
 0x192   : > { %v1218_v9 = vperm.slane %v1217_v2, 0  ;;  %v1219_v10 = vperm.slane %v1217_v2, 1  ;;  %v1220_v13 = vperm.slane %v1217_v2, 2 }
 0x194   : > { %v923_v58 = vpop.f32.mrf.mxu3  ;;  %v1001_v59 = vpop.f32.mrf.mxu2  ;;  %vm4013_vm15 = vcmp.eq.s32.totalorder %v1218_v9, 1  ;;  %vm4017_vm0 = vcmp.eq.s32.totalorder %v1219_v10, 1  ;;  %vm4021_vm1 = vcmp.eq.s32.totalorder %v1220_v13, 1  ;;  %v1802_v10 = vld [vmem:[%s4396_s4] sm:$0x3] }
 0x195   : > { %v1019_v19 = vadd.f32 %v1001_v59, %v939_v15 }
 0x196   : > { %v990_v60 = vpop.f32.mrf.mxu1  ;;  %v1068_v61 = vpop.f32.mrf.mxu0 }
 0x197   : > { %v1098_v35 = vadd.f32 %v1068_v61, %v1018_v32 }
 0x19c   : > { %v1003_v4 = vpop.f32.mrf.mxu2  ;;  %v1014_v6 = vpop.f32.mrf.mxu3 }
 0x19d   : > { %v1020_v36 = vadd.f32 %v1014_v6, %v940_v31  ;;  %v1454_v4 = vld [vmem:[%s4396_s4] sm:$0x3] }
 0x19e   : > { %v1070_v11 = vpop.f32.mrf.mxu0  ;;  %v1081_v12 = vpop.f32.mrf.mxu1  ;;  %1460 = vst [vmem:[#allocation1] ss:$4 sm:$0xff] %v1454_v4  ;;  %v3157_v4 = vld [vmem:[#allocation2] sm:$0xf] }
 0x19f   : > { %v1099_v24 = vadd.f32 %v1081_v12, %v1019_v19 }
 0x1a4   : > { %v1016_v20 = vpop.f32.mrf.mxu3  ;;  %v1094_v21 = vpop.f32.mrf.mxu2 }
 0x1a5   : > { %v1100_v37 = vadd.f32 %v1094_v21, %v1020_v36 }
 0x1a6   : > { %v1083_v26 = vpop.f32.mrf.mxu1  ;;  %v1161_v27 = vpop.f32.mrf.mxu0 }
 0x1a7   : > { %v1179_v1 = vadd.f32 %v1161_v27, %v1099_v24  ;;  %v4025_v24 = vld.sshfl [vmem:[#allocation1] sm:$0xff pattern:$0x73625140] }
 0x1a9   : > { %v1188_v34 = vadd.f32 %v1185_v25, %v1179_v1 }
 0x1ab   : > { %v1194_v38 = vmul.f32 0.044715, %v1188_v34  ;;  %v1191_v11 = vmul.f32 0.5, %v1188_v34 }
 0x1ac   : > { %v1096_v33 = vpop.f32.mrf.mxu2  ;;  %v1148_v29 = vpop.f32.mrf.mxu3 }
 0x1ad   : > { %v1197_v39 = vmul.f32 %v1194_v38, %v1188_v34  ;;  %v1178_v40 = vadd.f32 %v1148_v29, %v1098_v35 }
 0x1ae   : > { %v1163_v41 = vpop.f32.mrf.mxu0  ;;  %v1174_v42 = vpop.f32.mrf.mxu1 }
 0x1af   : > { %v1200_v43 = vmul.f32 %v1197_v39, %v1188_v34  ;;  %v1187_v44 = vadd.f32 %v1185_v25, %v1178_v40  ;;  %v1180_v45 = vadd.f32 %v1174_v42, %v1100_v37  ;;  %v3124_v40 = vld [vmem:[#allocation2 + $0x8] sm:$0xf]  ;;  %v3393_v41 = vld [vmem:[#allocation2 + $0x4] sm:$0xf]  ;;  %v1638_v42 = vld [vmem:[%s4396_s4] sm:$0x3] }
 0x1b1   : > { %v1203_v46 = vadd.f32 %v1200_v43, %v1188_v34  ;;  %v1193_v47 = vmul.f32 0.044715, %v1187_v44  ;;  %v1189_v48 = vadd.f32 %v1185_v25, %v1180_v45  ;;  %v1190_v14 = vmul.f32 0.5, %v1187_v44  ;;  %v1546_v25 = vld [vmem:[%s4396_s4] sm:$0x3] }
 0x1b2   : > { %1552 = vst [vmem:[#allocation1] ss:$4 sm:$0xff] %v1546_v25 }
 0x1b3   : > { %v1206_v50 = vmul.f32 0.7978846, %v1203_v46  ;;  %v1196_v51 = vmul.f32 %v1193_v47, %v1187_v44  ;;  %v1195_v52 = vmul.f32 0.044715, %v1189_v48  ;;  %v1192_v21 = vmul.f32 0.5, %v1189_v48 }
 0x1b4   : > { %v1150_v53 = vpop.f32.mrf.mxu3  ;;  %v3394_v46 = vld [vmem:[#allocation2 + $0xc] sm:$0xf] }
 0x1b5   : > { %3525 = vtanh.f32 %v1206_v50  ;;  %v1199_v54 = vmul.f32 %v1196_v51, %v1187_v44  ;;  %v1198_v55 = vmul.f32 %v1195_v52, %v1189_v48  ;;  %v1716_v52 = vld [vmem:[%s4396_s4] sm:$0x3] }
 0x1b6   : > { %v1176_v57 = vpop.f32.mrf.mxu1 }
 0x1b7   : > { %v1202_v58 = vadd.f32 %v1199_v54, %v1187_v44  ;;  %v1201_v59 = vmul.f32 %v1198_v55, %v1189_v48  ;;  %v3397_v54 = vld [vmem:[#allocation2 + $0x4] sm:$0xf] }
 0x1b8   : > { %v3401_v57 = vld [vmem:[#allocation2 + $0x4] sm:$0xf] }
 0x1b9   : > { %v1205_v60 = vmul.f32 0.7978846, %v1202_v58  ;;  %v1204_v61 = vadd.f32 %v1201_v59, %v1189_v48  ;;  %v1553_v39 = vld.sshfl [vmem:[#allocation1] sm:$0xff pattern:$0x73625140] }
 0x1ba   : > { %1644 = vst [vmem:[#allocation1] ss:$4 sm:$0xff] %v1638_v42 }
 0x1bb   : > { %v3526_v62 = vpop.eup %3525  ;;  %3527 = vtanh.f32 %v1205_v60  ;;  %v1207_v63 = vmul.f32 0.7978846, %v1204_v61  ;;  %v3138_v60 = vld [vmem:[#allocation2] sm:$0xf]  ;;  %v3399_v61 = vld [vmem:[#allocation2 + $0xc] sm:$0x30] }
 0x1bc   : > { %v1212_v6 = vadd.f32 1.0, %v3526_v62  ;;  %v3139_v62 = vor.u32 %v3399_v61, %v3138_v60 }
 0x1bd   : > { %3529 = vtanh.f32 %v1207_v63  ;;  %v3146_v63 = vld [vmem:[#allocation2 + $0x8] sm:$0xf] }
 0x1be   : > { %v1215_v17 = vmul.f32 %v1212_v6, %v1191_v11  ;;  %v3403_v6 = vld [vmem:[#allocation2 + $0xc] sm:$0x30]  ;;  %v3398_v11 = vld [vmem:[#allocation2 + $0xc] sm:$0xf] }
 0x1c0   : > { %v1225_v27 = vsel %vm4017_vm0, %v1215_v17, 0.0  ;;  %v3165_v17 = vld [vmem:[#allocation2 + $0x8] sm:$0xf] }
 0x1c1   : > { %v3528_v12 = vpop.eup %3527  ;;  %v1645_v53 = vld.sshfl [vmem:[#allocation1] sm:$0xff pattern:$0x73625140] }
 0x1c2   : > { %v1211_v15 = vadd.f32 1.0, %v3528_v12  ;;  %1722 = vst [vmem:[#allocation1] ss:$4 sm:$0xff] %v1716_v52 }
 0x1c3   : > { %v3530_v18 = vpop.eup %3529 }
 0x1c4   : > { %v1214_v20 = vmul.f32 %v1211_v15, %v1190_v14  ;;  %v1213_v22 = vadd.f32 1.0, %v3530_v18  ;;  %v3402_v14 = vld [vmem:[#allocation2 + $0xc] sm:$0xf] }
 0x1c6   : > { %v1224_v26 = vsel %vm4013_vm15, %v1214_v20, 0.0  ;;  %v1216_v28 = vmul.f32 %v1213_v22, %v1192_v21  ;;  %v3411_v21 = vld [vmem:[#allocation2 + $0x8] sm:$0xf] }
 0x1c7   : > { %v1227_v30 = vpack.c.bf16 %v1225_v27, %v1224_v26  ;;  %v1888_v26 = vld [vmem:[%s4396_s4] sm:$0x3] }
 0x1c8   : > { %v1226_v1 = vsel %vm4021_vm1, %v1216_v28, 0.0  ;;  %v3408_v28 = vld [vmem:[#allocation2 + $0x8] sm:$0xf] }
 0x1c9   : > { %1229 = vst [vmem:[#allocation2 + $0x14] sm:$0x33] %v1227_v30  ;;  %v1240_v31 = vunpack.c.l.b16 %v1227_v30  ;;  %v1241_v32 = vunpack.c.h.b16 %v1227_v30  ;;  %v1228_v34 = vpack.c.bf16 %v1226_v1, %v1226_v1  ;;  %v1723_v9 = vld.sshfl [vmem:[#allocation1] sm:$0xff pattern:$0x73625140] }
 0x1ca   : > { %1808 = vst [vmem:[#allocation1] ss:$4 sm:$0xff] %v1802_v10  ;;  %v3199_v1 = vld [vmem:[#allocation2 + $0xc] sm:$0xf] }
 0x1cb   : > { %v1243_v35 = vpack.c.b16 %v1240_v31, %v1240_v31  ;;  %v1244_v36 = vpack.c.b16 %v1241_v32, %v1241_v32  ;;  %1231 = vst.msk [vmem:[#allocation2 + $0x1c] sm:$0x3] %vm1230_vm2, %v1228_v34  ;;  %v1242_v38 = vunpack.c.l.b16 %v1228_v34  ;;  %v3414_v32 = vld [vmem:[#allocation2 + $0x8] sm:$0xf]  ;;  %vm2108_vm2 = vcmask 551938  }
 0x1cd   : > { %v1252_v33 = vsel %vm1250_vm3, %v1243_v35, 0  ;;  %v1255_v29 = vsel %vm1250_vm3, %v1244_v36, 0  ;;  %v1245_v37 = vpack.c.b16 %v1242_v38, %v1242_v38 }
 0x1ce   : > { %1267 = vmatpush.bf16.msrb.mxu2 %v1252_v33  ;;  %1280 = vmatpush.bf16.msrb.mxu3 %v1255_v29  ;;  %v3191_v33 = vld [vmem:[#allocation2 + $0x4] sm:$0xf] }
 0x1cf   : > { %v1258_v43 = vsel %vm1250_vm3, %v1245_v37, 0  ;;  %v3206_v37 = vld [vmem:[#allocation2 + $0x4] sm:$0xf] }
 0x1d0   : > { %1293 = vmatpush.bf16.msra.mxu0 %v1258_v43  ;;  %v3396_v44 = vld [vmem:[#allocation2 + $0x14] sm:$0x30]  ;;  %v3118_v45 = vld [vmem:[#allocation2 + $0x10] sm:$0x30] }
 0x1d1   : > { %v3125_v47 = vor.u32 %v3396_v44, %v3124_v40  ;;  %v3121_v48 = vor.u32 %v3393_v41, %v3118_v45  ;;  %v3140_v55 = vld [vmem:[#allocation2 + $0x10] sm:$0x30]  ;;  %v3400_v2 = vld [vmem:[#allocation2 + $0x14] sm:$0x30]  ;;  %v3214_v40 = vld [vmem:[#allocation2 + $0xc] sm:$0xf]  ;;  %v1237_v45 = vpop.permute.xlu1 %1236 }
 0x1d2   : > { %v3126_v50 = vld [vmem:[#allocation2 + $0x18] sm:$0x30]  ;;  %v3143_v56 = vor.u32 %v3397_v54, %v3140_v55  ;;  %v3159_v58 = vld [vmem:[#allocation2 + $0x10] sm:$0x30]  ;;  %v3404_v18 = vld [vmem:[#allocation2 + $0x14] sm:$0x30]  ;;  %3111 = vmatmul.msk.bf16.vlgmr.msrb.gmra.mxu2 %vm1246_vm4, %v1237_v45  ;;  %3112 = vmatmul.msk.bf16.vlgmr.msrb.gmra.mxu3 %vm1246_vm4, %v1237_v45 }
 0x1d3   : > { %1333 = vrot.lane.b32.xlu1 %v3125_v47, %s3646_s21  ;;  %1331 = vrot.lane.b32.xlu2 %v3121_v48, %s3646_s21  ;;  %v3129_v51 = vor.u32 %v3394_v46, %v3126_v50  ;;  %v3162_v59 = vor.u32 %v3401_v57, %v3159_v58  ;;  %v3148_v12 = vld [vmem:[#allocation2 + $0x18] sm:$0x30]  ;;  %v3208_v22 = vld [vmem:[#allocation2 + $0x14] sm:$0x30]  ;;  %v3166_v25 = vor.u32 %v3404_v18, %v3165_v17  ;;  %v3409_v29 = vld [vmem:[#allocation2 + $0x10] sm:$0x30] }
 0x1d4   : > { %v3151_v13 = vor.u32 %v3398_v11, %v3148_v12  ;;  %v3167_v15 = vld [vmem:[#allocation2 + $0x18] sm:$0x30]  ;;  %v3211_v27 = vor.u32 %v3411_v21, %v3208_v22  ;;  %v3193_v30 = vld [vmem:[#allocation2 + $0x14] sm:$0x30]  ;;  %v3192_v42 = vor.u32 %v3409_v29, %v3191_v33  ;;  %v3415_v50 = vld [vmem:[#allocation2 + $0x10] sm:$0x30]  ;;  %3113 = vmatmul.msk.bf16.vlgmr.msra.gmra.mxu0 %vm1246_vm4, %v1237_v45 }
 0x1d5   : > { %1399 = vrot.lane.b32.xlu0 %v3129_v51, %s4414_s27  ;;  %v1809_v20 = vld.sshfl [vmem:[#allocation1] sm:$0xff pattern:$0x73625140]  ;;  %v3196_v35 = vor.u32 %v3408_v28, %v3193_v30  ;;  %v3229_v55 = vld [vmem:[#allocation2 + $0xc] sm:$0xf] }
 0x1d6   : > { %1894 = vst [vmem:[#allocation1] ss:$4 sm:$0xff] %v1888_v26  ;;  %v3410_v31 = vld [vmem:[#allocation2 + $0x18] sm:$0x30]  ;;  %v3223_v34 = vld [vmem:[#allocation2 + $0x14] sm:$0x30] }
 0x1d7   : > { %v3200_v36 = vor.u32 %v3410_v31, %v3199_v1  ;;  %v3226_v38 = vor.u32 %v3414_v32, %v3223_v34  ;;  %v3413_v41 = vld [vmem:[#allocation2 + $0x18] sm:$0x30]  ;;  %v2060_v58 = vld [vmem:[%s4397_s5] sm:$0xf]  ;;  %v3405_v30 = vld [vmem:[#allocation2 + $0x8] sm:$0xf] }
 0x1d8   : > { %v3215_v44 = vor.u32 %v3413_v41, %v3214_v40  ;;  %v3419_v52 = vld [vmem:[#allocation2 + $0x18] sm:$0x30]  ;;  %v3238_v60 = vld [vmem:[#allocation2 + $0x14] sm:$0x30] }
 0x1d9   : > { %v3178_v1 = vld [vmem:[#allocation2 + $0x14] sm:$0x30] }
 0x1db   : > { %1335 = vrot.lane.b32.xlu1 %v3129_v51, %s3646_s21  ;;  %1311 = vrot.lane.b32.xlu2 %v4008_v3, %s3662_s12  ;;  %v3147_v3 = vor.u32 %v3400_v2, %v3146_v63  ;;  %v3244_v51 = vld [vmem:[#allocation2 + $0xc] sm:$0xf]  ;;  %v1330_v63 = vpop.permute.xlu0 %1329 }
 0x1dc   : > { %v3245_v54 = vor.u32 %v3419_v52, %v3244_v51 }
 0x1dd   : > { %1483 = vrot.lane.b32.xlu0 %v3143_v56, %s3648_s13  ;;  %v1895_v46 = vld.sshfl [vmem:[#allocation1] sm:$0xff pattern:$0x73625140] }
 0x1de   : > { %v3416_v56 = vld [vmem:[#allocation2 + $0x18] sm:$0x30] }
 0x1df   : > { %v3230_v57 = vor.u32 %v3416_v56, %v3229_v55  ;;  %v3176_v56 = vld [vmem:[#allocation2 + $0x4] sm:$0xf] }
 0x1e3   : > { %1393 = vrot.lane.b32.xlu1 %v3990_v0, %s4414_s27  ;;  %1397 = vrot.lane.b32.xlu2 %v3125_v47, %s4414_s27  ;;  %v3158_v0 = vor.u32 %v3403_v6, %v3157_v4  ;;  %v1974_v47 = vld [vmem:[%s4396_s4] sm:$0x3]  ;;  %v3236_v4 = vld [vmem:[#allocation2 + $0x4] sm:$0xf]  ;;  %v3418_v6 = vld [vmem:[#allocation2 + $0x10] sm:$0x30] }
 0x1e4   : > { %1980 = vst [vmem:[#allocation1] ss:$4 sm:$0xff] %v1974_v47  ;;  %v3407_v47 = vld [vmem:[#allocation2 + $0x18] sm:$0x30] }
 0x1e5   : > { %1575 = vrot.lane.b32.xlu0 %v3162_v59, %s3650_s23  ;;  %v3417_v59 = vld [vmem:[#allocation2 + $0x8] sm:$0xf] }
 0x1eb   : > { %1395 = vrot.lane.b32.xlu1 %v3121_v48, %s4414_s27  ;;  %1481 = vrot.lane.b32.xlu2 %v3139_v62, %s3648_s13  ;;  %s3664_s27 = smov 68   ;;  %v3221_v48 = vld [vmem:[#allocation2 + $0x4] sm:$0xf]  ;;  %v1981_v61 = vld.sshfl [vmem:[#allocation1] sm:$0xff pattern:$0x73625140]  ;;  %v3241_v62 = vor.u32 %v3417_v59, %v3238_v60 }
 0x1ed   : > { %1485 = vrot.lane.b32.xlu0 %v3147_v3, %s3648_s13 }
 0x1f3   : > { %1463 = vrot.lane.b32.xlu1 %v4025_v24, %s3651_s20  ;;  %1573 = vrot.lane.b32.xlu2 %v3158_v0, %s3650_s23  ;;  %v3170_v24 = vor.u32 %v3402_v14, %v3167_v15  ;;  %s4436_s20 = smov 109  }
 0x1f5   : > { %1647 = vrot.lane.b32.xlu0 %v1645_v53, %s3657_s30  ;;  %v3222_v53 = vor.u32 %v3415_v50, %v3221_v48 }
 0x1fb   : > { %1487 = vrot.lane.b32.xlu1 %v3151_v13, %s3648_s13  ;;  %1555 = vrot.lane.b32.xlu2 %v1553_v39, %s3663_s11  ;;  %v3412_v39 = vld [vmem:[#allocation2 + $0x10] sm:$0x30]  ;;  %s3665_s11 = smov 56  }
 0x1fc   : > { %v3207_v43 = vor.u32 %v3412_v39, %v3206_v37 }
 0x1fd   : > { %1725 = vrot.lane.b32.xlu0 %v1723_v9, %s3664_s27  ;;  %v3237_v9 = vor.u32 %v3418_v6, %v3236_v4  ;;  %s4438_s27 = smov 19  }
 0x203   : > { %1579 = vrot.lane.b32.xlu1 %v3170_v24, %s3650_s23  ;;  %1577 = vrot.lane.b32.xlu2 %v3166_v25, %s3650_s23 }
 0x205   : > { %1828 = vrot.lane.b32.xlu0 %v3211_v27, %s4419_s18 }
 0x20b   : > { %1742 = vrot.lane.b32.xlu1 %v3196_v35, %s3653_s25  ;;  %1744 = vrot.lane.b32.xlu2 %v3200_v36, %s3653_s25  ;;  %v3181_v35 = vor.u32 %v3405_v30, %v3178_v1 }
 0x20d   : > { %1914 = vrot.lane.b32.xlu0 %v3226_v38, %s4416_s29  ;;  %v1669_v33 = vsel %vm1344_vm5, %v3181_v35, 0 }
 0x213   : > { %1740 = vrot.lane.b32.xlu1 %v3192_v42, %s3653_s25  ;;  %1826 = vrot.lane.b32.xlu2 %v3207_v43, %s4419_s18  ;;  %v3184_v42 = vld [vmem:[#allocation2 + $0xc] sm:$0xf] }
 0x214   : > { %v3185_v51 = vor.u32 %v3407_v47, %v3184_v42 }
 0x215   : > { %1830 = vrot.lane.b32.xlu0 %v3215_v44, %s4419_s18  ;;  %s3596_s18 = scalar_lea.hbm %s4402_s10, 48 }
 0x21b   : > { %1811 = vrot.lane.b32.xlu1 %v1809_v20, %s3665_s11  ;;  %1912 = vrot.lane.b32.xlu2 %v3222_v53, %s4416_s29  ;;  %s4418_s11 = smov 32  }
 0x21d   : > { %2002 = vrot.lane.b32.xlu0 %v3245_v54, %s4436_s20  ;;  %v1672_v54 = vsel %vm1344_vm5, %v3185_v51, 0 }
 0x223   : > { %1916 = vrot.lane.b32.xlu1 %v3230_v57, %s4416_s29  ;;  %1897 = vrot.lane.b32.xlu2 %v1895_v46, %s3666_s15  ;;  %v3406_v57 = vld [vmem:[#allocation2 + $0x10] sm:$0x30]  ;;  %s4437_s29 = smov 112   ;;  %s4439_s15 = smov 96  }
 0x224   : > { %v3177_v59 = vor.u32 %v3406_v57, %v3176_v56 }
 0x225   : > { %2063 = vperm.xlu0 %3523, %v2060_v58  }
 0x22b   : > { %2000 = vrot.lane.b32.xlu2 %v3241_v62, %s4436_s20  ;;  %1983 = vrot.lane.b32.xlu1 %v1981_v61, %s4418_s11 }
 0x22d   : > { %v1332_v2 = vpop.permute.xlu2 %1331 }
 0x22e   : > { %v1337_v3 = vsel %vm503_vm7, %v1330_v63, %v1332_v2 }
 0x22f   : > { %v1346_v0 = vsel %vm1344_vm5, %v1337_v3, 0 }
 0x230   : > { %1361 = vmatpush.bf16.msra.mxu1 %v1346_v0 }
 0x233   : > { %1998 = vrot.lane.b32.xlu2 %v3237_v9, %s4436_s20 }
 0x235   : > { %v1312_v10 = vpop.permute.xlu2 %1311 }
 0x236   : > { %3130 = vmatmul.msk.bf16.vlgmr.msra.gmra.mxu1 %vm1340_vm14, %v1312_v10 }
 0x23d   : > { %v1398_v11 = vpop.permute.xlu2 %1397 }
 0x245   : > { %v1334_v12 = vpop.permute.xlu1 %1333  ;;  %v1482_v13 = vpop.permute.xlu2 %1481 }
 0x246   : > { %v1338_v14 = vsel %vm503_vm7, %v1332_v2, %v1334_v12  ;;  %v1666_v2 = vsel %vm1344_vm5, %v3177_v59, 0 }
 0x247   : > { %v1349_v15 = vsel %vm1344_vm5, %v1338_v14, 0  ;;  %v1400_v17 = vpop.permute.xlu0 %1399 }
 0x248   : > { %v1403_v18 = vsel %vm566_vm6, %v1398_v11, %v1400_v17  ;;  %1374 = vmatpush.bf16.msra.mxu2 %v1349_v15 }
 0x249   : > { %v1413_v20 = vsel %vm1344_vm5, %v1403_v18, 0 }
 0x24b   : > { %3131 = vmatmul.msk.bf16.vlgmr.msra.gmra.mxu2 %vm1340_vm14, %v1312_v10 }
 0x24c   : > { %1448 = vmatpush.bf16.msrb.mxu2 %v1413_v20 }
 0x24d   : > { %v1336_v21 = vpop.permute.xlu1 %1335  ;;  %v1574_v22 = vpop.permute.xlu2 %1573 }
 0x24e   : > { %v1339_v24 = vsel %vm503_vm7, %v1334_v12, %v1336_v21 }
 0x24f   : > { %v1352_v25 = vsel %vm1344_vm5, %v1339_v24, 0  ;;  %v1484_v26 = vpop.permute.xlu0 %1483 }
 0x250   : > { %v1489_v27 = vsel %vm647_vm8, %v1482_v13, %v1484_v26  ;;  %1387 = vmatpush.bf16.msra.mxu3 %v1352_v25 }
 0x251   : > { %v1496_v28 = vsel %vm1344_vm5, %v1489_v27, 0 }
 0x253   : > { %3132 = vmatmul.msk.bf16.vlgmr.msra.gmra.mxu3 %vm1340_vm14, %v1312_v10 }
 0x254   : > { %1511 = vmatpush.bf16.msrb.mxu3 %v1496_v28 }
 0x255   : > { %v1394_v31 = vpop.permute.xlu1 %1393  ;;  %v4107_v32 = vpop.permute.xlu2 %1555 }
 0x256   : > { %v4170_v42 = vpop.f32.mrf.mxu2 }
 0x257   : > { %v1576_v34 = vpop.permute.xlu0 %1575 }
 0x258   : > { %v1581_v36 = vsel %vm732_vm9, %v1574_v22, %v1576_v34 }
 0x259   : > { %v1588_v38 = vsel %vm1344_vm5, %v1581_v36, 0 }
 0x25a   : > { %1603 = vmatpush.bf16.msra.mxu2 %v1588_v38 }
 0x25b   : > { %3135 = vmatmul.msk.bf16.vlgmr.msrb.gmra.mxu2 %vm1340_vm14, %v4001_v49 }
 0x25d   : > { %v1396_v29 = vpop.permute.xlu1 %1395  ;;  %v1578_v37 = vpop.permute.xlu2 %1577 }
 0x25e   : > { %1694 = vmatpush.bf16.msrb.mxu2 %v1669_v33  ;;  %v1401_v39 = vsel %vm566_vm6, %v1394_v31, %v1396_v29  ;;  %v1402_v40 = vsel %vm566_vm6, %v1396_v29, %v1398_v11  ;;  %v1582_v41 = vsel %vm732_vm9, %v1576_v34, %v1578_v37  ;;  %v4163_v33 = vpop.f32.mrf.mxu0 }
 0x25f   : > { %v1407_v43 = vsel %vm1344_vm5, %v1401_v39, 0  ;;  %v1410_v44 = vsel %vm1344_vm5, %v1402_v40, 0  ;;  %v1591_v45 = vsel %vm1344_vm5, %v1582_v41, 0  ;;  %v1486_v46 = vpop.permute.xlu0 %1485 }
 0x260   : > { %v1490_v48 = vsel %vm647_vm8, %v1484_v26, %v1486_v46  ;;  %1422 = vmatpush.bf16.msrb.mxu0 %v1407_v43  ;;  %1435 = vmatpush.bf16.msrb.mxu1 %v1410_v44  ;;  %v4172_v43 = vpop.f32.mrf.mxu3 }
 0x261   : > { %v1499_v50 = vsel %vm1344_vm5, %v1490_v48, 0  ;;  %1616 = vmatpush.bf16.msra.mxu3 %v1591_v45  ;;  %v1271_v45 = vpop.f32.mrf.mxu2 }
 0x263   : > { %3133 = vmatmul.msk.bf16.vlgmr.msrb.gmra.mxu0 %vm1340_vm14, %v4001_v49  ;;  %3134 = vmatmul.msk.bf16.vlgmr.msrb.gmra.mxu1 %vm1340_vm14, %v4001_v49 }
 0x264   : > { %1524 = vmatpush.bf16.msra.mxu0 %v1499_v50 }
 0x265   : > { %v1464_v52 = vpop.permute.xlu1 %1463  ;;  %v1745_v53 = vpop.permute.xlu2 %1744 }
 0x266   : > { %3152 = vmatmul.msk.bf16.vlgmr.msrb.gmra.mxu3 %vm1340_vm14, %v1464_v52  ;;  %v1758_v58 = vsel %vm1344_vm5, %v1745_v53, 0  ;;  %v1297_v44 = vpop.f32.mrf.mxu0 }
 0x267   : > { %1707 = vmatpush.bf16.msrb.mxu3 %v1672_v54  ;;  %v1648_v55 = vpop.permute.xlu0 %1647 }
 0x26b   : > { %3171 = vmatmul.msk.bf16.vlgmr.msra.gmra.mxu2 %vm1340_vm14, %v4107_v32 }
 0x26c   : > { %1793 = vmatpush.bf16.msra.mxu2 %v1758_v58 }
 0x26d   : > { %v1488_v60 = vpop.permute.xlu1 %1487  ;;  %v1827_v61 = vpop.permute.xlu2 %1826 }
 0x26e   : > { %v1491_v49 = vsel %vm647_vm8, %v1486_v46, %v1488_v60  ;;  %v1284_v46 = vpop.f32.mrf.mxu3 }
 0x26f   : > { %v1502_v62 = vsel %vm1344_vm5, %v1491_v49, 0  ;;  %v1726_v63 = vpop.permute.xlu0 %1725 }
 0x270   : > { %1537 = vmatpush.bf16.msra.mxu1 %v1502_v62 }
 0x273   : > { %3153 = vmatmul.msk.bf16.vlgmr.msra.gmra.mxu0 %vm1340_vm14, %v1464_v52  ;;  %3154 = vmatmul.msk.bf16.vlgmr.msra.gmra.mxu1 %vm1340_vm14, %v1464_v52 }
 0x274   : > { %1681 = vmatpush.bf16.msrb.mxu1 %v1666_v2 }
 0x275   : > { %v1580_v3 = vpop.permute.xlu1 %1579  ;;  %v1913_v4 = vpop.permute.xlu2 %1912 }
 0x276   : > { %v1583_v6 = vsel %vm732_vm9, %v1578_v37, %v1580_v3  ;;  %3172 = vmatmul.msk.bf16.vlgmr.msra.gmra.mxu3 %vm1340_vm14, %v4107_v32 }
 0x277   : > { %v1594_v0 = vsel %vm1344_vm5, %v1583_v6, 0  ;;  %v1829_v9 = vpop.permute.xlu0 %1828 }
 0x278   : > { %v1832_v10 = vsel %vm964_vm11, %v1827_v61, %v1829_v9  ;;  %1629 = vmatpush.bf16.msrb.mxu0 %v1594_v0 }
 0x279   : > { %v1838_v11 = vsel %vm1344_vm5, %v1832_v10, 0 }
 0x27a   : > { %1853 = vmatpush.bf16.msra.mxu3 %v1838_v11 }
 0x27b   : > { %3187 = vmatmul.msk.bf16.vlgmr.msrb.gmra.mxu2 %vm1340_vm14, %v1648_v55 }
 0x27d   : > { %v1743_v12 = vpop.permute.xlu1 %1742  ;;  %v1898_v13 = vpop.permute.xlu2 %1897 }
 0x27e   : > { %v1747_v14 = vsel %vm884_vm10, %v1743_v12, %v1745_v53 }
 0x27f   : > { %v1755_v15 = vsel %vm1344_vm5, %v1747_v14, 0  ;;  %v1915_v17 = vpop.permute.xlu0 %1914 }
 0x280   : > { %v1918_v18 = vsel %vm1044_vm12, %v1913_v4, %v1915_v17  ;;  %1780 = vmatpush.bf16.msra.mxu1 %v1755_v15 }
 0x281   : > { %v1924_v20 = vsel %vm1344_vm5, %v1918_v18, 0 }
 0x282   : > { %1939 = vmatpush.bf16.msrb.mxu2 %v1924_v20 }
 0x283   : > { %3173 = vmatmul.msk.bf16.vlgmr.msrb.gmra.mxu0 %vm1340_vm14, %v4107_v32  ;;  %3186 = vmatmul.msk.bf16.vlgmr.msrb.gmra.mxu1 %vm1340_vm14, %v1648_v55 }
 0x285   : > { %v1741_v21 = vpop.permute.xlu1 %1740  ;;  %v2001_v22 = vpop.permute.xlu2 %2000 }
 0x286   : > { %v1746_v24 = vsel %vm884_vm10, %v1741_v21, %v1743_v12  ;;  %3188 = vmatmul.msk.bf16.vlgmr.msrb.gmra.mxu3 %vm1340_vm14, %v1648_v55 }
 0x287   : > { %v1752_v25 = vsel %vm1344_vm5, %v1746_v24, 0  ;;  %v1831_v26 = vpop.permute.xlu0 %1830 }
 0x288   : > { %v1833_v27 = vsel %vm964_vm11, %v1829_v9, %v1831_v26  ;;  %v1844_v28 = vsel %vm1344_vm5, %v1831_v26, 0  ;;  %1767 = vmatpush.bf16.msra.mxu0 %v1752_v25 }
 0x289   : > { %v1841_v30 = vsel %vm1344_vm5, %v1833_v27, 0  ;;  %1879 = vmatpush.bf16.msrb.mxu1 %v1844_v28 }
 0x28b   : > { %3203 = vmatmul.msk.bf16.vlgmr.msra.gmra.mxu2 %vm1340_vm14, %v1726_v63 }
 0x28c   : > { %1866 = vmatpush.bf16.msrb.mxu0 %v1841_v30 }
 0x28d   : > { %v1812_v1 = vpop.permute.xlu1 %1811  ;;  %v1999_v31 = vpop.permute.xlu2 %1998 }
 0x28e   : > { %v2004_v34 = vsel %vm1124_vm13, %v1999_v31, %v2001_v22 }
 0x28f   : > { %v2003_v32 = vpop.permute.xlu0 %2002  ;;  %v2010_v38 = vsel %vm1344_vm5, %v2004_v34, 0 }
 0x290   : > { %v2005_v35 = vsel %vm1124_vm13, %v2001_v22, %v2003_v32  ;;  %v2016_v41 = vsel %vm1344_vm5, %v2003_v32, 0 }
 0x291   : > { %v2013_v36 = vsel %vm1344_vm5, %v2005_v35, 0  ;;  %v2110_v35 = vld [vmem:[%s4400_s8] sm:$0xf] }
 0x292   : > { %2038 = vmatpush.bf16.msra.mxu2 %v2013_v36 }
 0x293   : > { %3201 = vmatmul.msk.bf16.vlgmr.msra.gmra.mxu0 %vm1340_vm14, %v1726_v63  ;;  %3202 = vmatmul.msk.bf16.vlgmr.msra.gmra.mxu1 %vm1340_vm14, %v1726_v63 }
 0x294   : > { %2025 = vmatpush.bf16.msra.mxu1 %v2010_v38  ;;  %v2112_v38 = vunpack.c.l.b16 %v2110_v35 }
 0x295   : > { %v1917_v29 = vpop.permute.xlu1 %1916 }
 0x296   : > { %v1919_v37 = vsel %vm1044_vm12, %v1915_v17, %v1917_v29  ;;  %v1930_v39 = vsel %vm1344_vm5, %v1917_v29, 0  ;;  %3216 = vmatmul.msk.bf16.vlgmr.msra.gmra.mxu3 %vm1340_vm14, %v1812_v1  ;;  %v4190_v29 = vld [vmem:[%s4398_s6] sm:$0x3] }
 0x297   : > { %v1927_v40 = vsel %vm1344_vm5, %v1919_v37, 0  ;;  %1965 = vmatpush.bf16.msra.mxu0 %v1930_v39  ;;  %v3254_v37 = vld [vmem:[#allocation2] sm:$0xf]  ;;  %v3422_v39 = vld [vmem:[#allocation2 + $0xc] sm:$0xf0]  ;;  %vm2217_vm5 = vcmask 130048  }
 0x298   : > { %1952 = vmatpush.bf16.msrb.mxu3 %v1927_v40  ;;  %2182 = vst [vmem:[#allocation1] ss:$4 sm:$0xff] %v4190_v29  ;;  %v4193_v44 = vor.u32 %v3422_v39, %v3254_v37 }
 0x29a   : > { %2203 = vrot.lane.b32.xlu2 %v4193_v44, %s3646_s21 }
 0x29b   : > { %3231 = vmatmul.msk.bf16.vlgmr.msrb.gmra.mxu2 %vm1340_vm14, %v1898_v13 }
 0x29c   : > { %2051 = vmatpush.bf16.msra.mxu3 %v2016_v41  ;;  %v2113_v41 = vpack.c.b16 %v2112_v38, %v2112_v38 }
 0x29d   : > { %v1984_v47 = vpop.permute.xlu1 %1983 }
 0x29e   : > { %2114 = vrot.lane.b32.xlu1 %v2113_v41, %s3662_s12 }
 0x2a3   : > { %3217 = vmatmul.msk.bf16.vlgmr.msrb.gmra.mxu0 %vm1340_vm14, %v1812_v1  ;;  %3218 = vmatmul.msk.bf16.vlgmr.msrb.gmra.mxu1 %vm1340_vm14, %v1812_v1 }
 0x2a6   : > { %3232 = vmatmul.msk.bf16.vlgmr.msrb.gmra.mxu3 %vm1340_vm14, %v1898_v13 }
 0x2ab   : > { %3247 = vmatmul.msk.bf16.vlgmr.msra.gmra.mxu2 %vm1340_vm14, %v1984_v47 }
 0x2b3   : > { %3233 = vmatmul.msk.bf16.vlgmr.msra.gmra.mxu0 %vm1340_vm14, %v1898_v13  ;;  %3246 = vmatmul.msk.bf16.vlgmr.msra.gmra.mxu1 %vm1340_vm14, %v1984_v47  ;;  %v1363_v48 = vpop.f32.mrf.mxu1 }
 0x2b6   : > { %3248 = vmatmul.msk.bf16.vlgmr.msra.gmra.mxu3 %vm1340_vm14, %v1984_v47 }
 0x2bb   : > { %v1365_v50 = vpop.f32.mrf.mxu1 }
 0x2ce   : > { %v1376_v51 = vpop.f32.mrf.mxu2 }
 0x2d6   : > { %v1378_v52 = vpop.f32.mrf.mxu2  ;;  %v1389_v53 = vpop.f32.mrf.mxu3 }
 0x2de   : > { %v1391_v54 = vpop.f32.mrf.mxu3  ;;  %v1450_v55 = vpop.f32.mrf.mxu2 }
 0x2df   : > { %v4182_v56 = vadd.f32 %v1450_v55, %v1389_v53 }
 0x2e0   : > { %v1424_v57 = vpop.f32.mrf.mxu0  ;;  %v1437_v58 = vpop.f32.mrf.mxu1 }
 0x2e1   : > { %v1425_v59 = vadd.f32 %v1424_v57, %v1363_v48  ;;  %v1438_v60 = vadd.f32 %v1437_v58, %v1376_v51  ;;  %v2183_v57 = vld.sshfl [vmem:[#allocation1] sm:$0xff pattern:$0x73625140] }
 0x2e2   : > { %2185 = vrot.lane.b32.xlu1 %v2183_v57, %s4437_s29 }
 0x2e6   : > { %v1452_v61 = vpop.f32.mrf.mxu2 }
 0x2e8   : > { %v1426_v49 = vpop.f32.mrf.mxu0  ;;  %v1439_v62 = vpop.f32.mrf.mxu1 }
 0x2e9   : > { %v1513_v63 = vpop.f32.mrf.mxu3 }
 0x2ea   : > { %v1543_v45 = vadd.f32 %v1513_v63, %v1425_v59  ;;  %v2064_v63 = vpop.permute.xlu0 %2063 }
 0x2ee   : > { %v1605_v2 = vpop.f32.mrf.mxu2 }
 0x2ef   : > { %v1635_v48 = vadd.f32 %v1605_v2, %v1543_v45 }
 0x2f0   : > { %v1526_v3 = vpop.f32.mrf.mxu0  ;;  %v1539_v4 = vpop.f32.mrf.mxu1 }
 0x2f1   : > { %v1515_v6 = vpop.f32.mrf.mxu3  ;;  %v1544_v40 = vadd.f32 %v1526_v3, %v1438_v60  ;;  %v1545_v59 = vadd.f32 %v1539_v4, %v4182_v56 }
 0x2f6   : > { %v1607_v0 = vpop.f32.mrf.mxu2 }
 0x2f8   : > { %v1528_v9 = vpop.f32.mrf.mxu0  ;;  %v1541_v10 = vpop.f32.mrf.mxu1 }
 0x2f9   : > { %v1618_v11 = vpop.f32.mrf.mxu3 }
 0x2fa   : > { %v1636_v46 = vadd.f32 %v1618_v11, %v1544_v40 }
 0x2fe   : > { %v1696_v12 = vpop.f32.mrf.mxu2 }
 0x2ff   : > { %v1714_v50 = vadd.f32 %v1696_v12, %v1636_v46 }
 0x300   : > { %v1631_v13 = vpop.f32.mrf.mxu0  ;;  %v1683_v14 = vpop.f32.mrf.mxu1 }
 0x301   : > { %v1620_v15 = vpop.f32.mrf.mxu3  ;;  %v1713_v53 = vadd.f32 %v1683_v14, %v1635_v48  ;;  %v1637_v2 = vadd.f32 %v1631_v13, %v1545_v59 }
 0x306   : > { %v1698_v17 = vpop.f32.mrf.mxu2 }
 0x308   : > { %v1633_v18 = vpop.f32.mrf.mxu0  ;;  %v1685_v20 = vpop.f32.mrf.mxu1 }
 0x309   : > { %v1709_v21 = vpop.f32.mrf.mxu3 }
 0x30a   : > { %v1715_v14 = vadd.f32 %v1709_v21, %v1637_v2 }
 0x30e   : > { %v1795_v22 = vpop.f32.mrf.mxu2 }
 0x30f   : > { %v1801_v18 = vadd.f32 %v1795_v22, %v1715_v14 }
 0x310   : > { %v1769_v24 = vpop.f32.mrf.mxu0  ;;  %v1782_v25 = vpop.f32.mrf.mxu1 }
 0x311   : > { %v1711_v26 = vpop.f32.mrf.mxu3  ;;  %v1800_v54 = vadd.f32 %v1782_v25, %v1714_v50  ;;  %v1799_v58 = vadd.f32 %v1769_v24, %v1713_v53 }
 0x316   : > { %v1797_v27 = vpop.f32.mrf.mxu2 }
 0x318   : > { %v1771_v28 = vpop.f32.mrf.mxu0  ;;  %v1784_v30 = vpop.f32.mrf.mxu1 }
 0x319   : > { %v1855_v1 = vpop.f32.mrf.mxu3 }
 0x31a   : > { %v1885_v61 = vadd.f32 %v1855_v1, %v1799_v58 }
 0x31e   : > { %v1941_v31 = vpop.f32.mrf.mxu2 }
 0x31f   : > { %v1971_v3 = vadd.f32 %v1941_v31, %v1885_v61 }
 0x320   : > { %v1868_v32 = vpop.f32.mrf.mxu0  ;;  %v1881_v34 = vpop.f32.mrf.mxu1 }
 0x321   : > { %v1857_v36 = vpop.f32.mrf.mxu3  ;;  %v1886_v60 = vadd.f32 %v1868_v32, %v1800_v54  ;;  %v1887_v25 = vadd.f32 %v1881_v34, %v1801_v18  ;;  %v2315_v54 = vld [vmem:[%s4398_s6] sm:$0x3] }
 0x322   : > { %2321 = vst [vmem:[#allocation1] ss:$4 sm:$0xff] %v2315_v54  ;;  %v3425_v54 = vld [vmem:[#allocation2 + $0xc] sm:$0xf] }
 0x326   : > { %v1943_v47 = vpop.f32.mrf.mxu2 }
 0x328   : > { %v1870_v51 = vpop.f32.mrf.mxu0  ;;  %v1883_v52 = vpop.f32.mrf.mxu1 }
 0x329   : > { %v1954_v55 = vpop.f32.mrf.mxu3 }
 0x32a   : > { %v1972_v49 = vadd.f32 %v1954_v55, %v1886_v60 }
 0x32e   : > { %v2040_v62 = vpop.f32.mrf.mxu2 }
 0x32f   : > { %v2058_v6 = vadd.f32 %v2040_v62, %v1972_v49 }
 0x330   : > { %v1967_v0 = vpop.f32.mrf.mxu0  ;;  %v2027_v9 = vpop.f32.mrf.mxu1 }
 0x331   : > { %v2067_v10 = vadd.f32 %v2064_v63, %v2058_v6  ;;  %v2057_v11 = vadd.f32 %v2027_v9, %v1971_v3  ;;  %v1956_v12 = vpop.f32.mrf.mxu3  ;;  %v1973_v4 = vadd.f32 %v1967_v0, %v1887_v25 }
 0x332   : > { %v3420_v12 = vld [vmem:[#allocation2 + $0x4] sm:$0xf] }
 0x333   : > { %v2073_v15 = vmul.f32 0.044715, %v2067_v10  ;;  %v2066_v17 = vadd.f32 %v2064_v63, %v2057_v11  ;;  %v2070_v41 = vmul.f32 0.5, %v2067_v10  ;;  %v3262_v11 = vld [vmem:[#allocation2 + $0x8] sm:$0xf] }
 0x335   : > { %v2076_v20 = vmul.f32 %v2073_v15, %v2067_v10  ;;  %v2072_v24 = vmul.f32 0.044715, %v2066_v17  ;;  %v2069_v48 = vmul.f32 0.5, %v2066_v17 }
 0x336   : > { %v2042_v26 = vpop.f32.mrf.mxu2 }
 0x337   : > { %v2079_v27 = vmul.f32 %v2076_v20, %v2067_v10  ;;  %v2075_v56 = vmul.f32 %v2072_v24, %v2066_v17 }
 0x338   : > { %v1969_v28 = vpop.f32.mrf.mxu0  ;;  %v2029_v30 = vpop.f32.mrf.mxu1 }
 0x339   : > { %v2082_v1 = vadd.f32 %v2079_v27, %v2067_v10  ;;  %v2078_v13 = vmul.f32 %v2075_v56, %v2066_v17  ;;  %v2053_v31 = vpop.f32.mrf.mxu3  ;;  %v2322_v56 = vld.sshfl [vmem:[#allocation1] sm:$0xff pattern:$0x73625140]  ;;  %v3421_v28 = vld [vmem:[#allocation2 + $0xc] sm:$0xf] }
 0x33a   : > { %v2059_v32 = vadd.f32 %v2053_v31, %v1973_v4  ;;  %v2401_v4 = vld [vmem:[%s4398_s6] sm:$0x3]  ;;  %v3426_v31 = vld [vmem:[#allocation2 + $0xc] sm:$0xf0] }
 0x33b   : > { %v2085_v35 = vmul.f32 0.7978846, %v2082_v1  ;;  %v2081_v36 = vadd.f32 %v2078_v13, %v2066_v17  ;;  %2407 = vst [vmem:[#allocation1] ss:$4 sm:$0xff] %v2401_v4  ;;  %v3276_v13 = vld [vmem:[#allocation2] sm:$0xf] }
 0x33c   : > { %v2068_v38 = vadd.f32 %v2064_v63, %v2059_v32 }
 0x33d   : > { %3531 = vtanh.f32 %v2085_v35  ;;  %v2084_v21 = vmul.f32 0.7978846, %v2081_v36  ;;  %v2487_v35 = vld [vmem:[%s4398_s6] sm:$0x3]  ;;  %v3277_v36 = vor.u32 %v3426_v31, %v3276_v13  ;;  %v3374_v13 = vld [vmem:[#allocation2 + $0x4] sm:$0xf] }
 0x33e   : > { %v2074_v37 = vmul.f32 0.044715, %v2068_v38  ;;  %v2071_v3 = vmul.f32 0.5, %v2068_v38 }
 0x33f   : > { %3533 = vtanh.f32 %v2084_v21  ;;  %v2559_v21 = vld [vmem:[%s4398_s6] sm:$0x3] }
 0x340   : > { %v2077_v22 = vmul.f32 %v2074_v37, %v2068_v38  ;;  %v3295_v37 = vld [vmem:[#allocation2] sm:$0xf] }
 0x341   : > { %v2055_v39 = vpop.f32.mrf.mxu3 }
 0x342   : > { %v2080_v34 = vmul.f32 %v2077_v22, %v2068_v38  ;;  %v2408_v32 = vld.sshfl [vmem:[#allocation1] sm:$0xff pattern:$0x73625140]  ;;  %v3430_v22 = vld [vmem:[#allocation2 + $0xc] sm:$0xf0] }
 0x343   : > { %v3532_v40 = vpop.eup %3531  ;;  %2493 = vst [vmem:[#allocation1] ss:$4 sm:$0xff] %v2487_v35  ;;  %v3284_v39 = vld [vmem:[#allocation2 + $0x8] sm:$0xf] }
 0x344   : > { %v2091_v45 = vadd.f32 1.0, %v3532_v40  ;;  %v2083_v46 = vadd.f32 %v2080_v34, %v2068_v38  ;;  %v3424_v40 = vld [vmem:[#allocation2 + $0x4] sm:$0xf] }
 0x345   : > { %v3534_v47 = vpop.eup %3533 }
 0x346   : > { %v2090_v50 = vadd.f32 1.0, %v3534_v47  ;;  %v2094_v51 = vmul.f32 %v2091_v45, %v2070_v41  ;;  %v2086_v52 = vmul.f32 0.7978846, %v2083_v46  ;;  %v3296_v45 = vor.u32 %v3430_v22, %v3295_v37  ;;  %v3444_v37 = vld [vmem:[#allocation2 + $0x8] sm:$0xf] }
 0x348   : > { %v2093_v53 = vmul.f32 %v2090_v50, %v2069_v48  ;;  %3535 = vtanh.f32 %v2086_v52  ;;  %v2097_v57 = vsel %vm4017_vm0, %v2094_v51, 0.0  ;;  %v3428_v50 = vld [vmem:[#allocation2 + $0x4] sm:$0xf]  ;;  %v3303_v52 = vld [vmem:[#allocation2 + $0x8] sm:$0xf] }
 0x34a   : > { %v2096_v55 = vsel %vm4013_vm15, %v2093_v53, 0.0  ;;  %v2494_v38 = vld.sshfl [vmem:[#allocation1] sm:$0xff pattern:$0x73625140] }
 0x34b   : > { %v2099_v58 = vpack.c.bf16 %v2097_v57, %v2096_v55  ;;  %2565 = vst [vmem:[#allocation1] ss:$4 sm:$0xff] %v2559_v21 }
 0x34d   : > { %v2103_v60 = vrot.slane %v2099_v58, 6  ;;  %v2116_v61 = vunpack.c.l.b16 %v2099_v58  ;;  %v2117_v49 = vunpack.c.h.b16 %v2099_v58 }
 0x34e   : > { %v3536_v59 = vpop.eup %3535 }
 0x34f   : > { %2107 = vst [vmem:[#allocation2 + $0x14] sm:$0xcc] %v2103_v60  ;;  %v2119_v62 = vpack.c.b16 %v2116_v61, %v2116_v61  ;;  %v2120_v63 = vpack.c.b16 %v2117_v49, %v2117_v49  ;;  %v2092_v6 = vadd.f32 1.0, %v3536_v59  ;;  %v2719_v49 = vld [vmem:[%s4398_s6] sm:$0x3] }
 0x350   : > { %v3429_v59 = vld [vmem:[#allocation2 + $0xc] sm:$0xf] }
 0x351   : > { %v2126_v2 = vsel %vm1250_vm3, %v2119_v62, 0  ;;  %v2129_v0 = vsel %vm1250_vm3, %v2120_v63, 0  ;;  %v2095_v9 = vmul.f32 %v2092_v6, %v2071_v3  ;;  %v3435_v63 = vld [vmem:[#allocation2 + $0x8] sm:$0xf] }
 0x352   : > { %2141 = vmatpush.bf16.msrb.mxu0 %v2126_v2  ;;  %2154 = vmatpush.bf16.msrb.mxu1 %v2129_v0  ;;  %v2566_v48 = vld.sshfl [vmem:[#allocation1] sm:$0xff pattern:$0x73625140]  ;;  %v3337_v0 = vld [vmem:[#allocation2 + $0xc] sm:$0xf] }
 0x353   : > { %v2098_v10 = vsel %vm4021_vm1, %v2095_v9, 0.0 }
 0x354   : > { %v2100_v14 = vpack.c.bf16 %v2098_v10, %v2098_v10  ;;  %v3329_v10 = vld [vmem:[#allocation2 + $0x4] sm:$0xf] }
 0x356   : > { %v3423_v15 = vld [vmem:[#allocation2 + $0x14] sm:$0xf0]  ;;  %v3256_v17 = vld [vmem:[#allocation2 + $0x10] sm:$0xf0]  ;;  %v2104_v18 = vrot.slane %v2100_v14, 6  ;;  %v2118_v20 = vunpack.c.l.b16 %v2100_v14 }
 0x357   : > { %v3263_v24 = vor.u32 %v3423_v15, %v3262_v11  ;;  %v3259_v25 = vor.u32 %v3420_v12, %v3256_v17  ;;  %v3427_v34 = vld [vmem:[#allocation2 + $0x14] sm:$0xf0]  ;;  %v3278_v41 = vld [vmem:[#allocation2 + $0x10] sm:$0xf0]  ;;  %v3344_v15 = vld [vmem:[#allocation2 + $0x4] sm:$0xf] }
 0x358   : > { %2109 = vst.msk [vmem:[#allocation2 + $0x1c] sm:$0xc] %vm2108_vm2, %v2104_v18  ;;  %v2121_v26 = vpack.c.b16 %v2118_v20, %v2118_v20  ;;  %v3285_v46 = vor.u32 %v3427_v34, %v3284_v39  ;;  %v3281_v47 = vor.u32 %v3424_v40, %v3278_v41  ;;  %v3297_v51 = vld [vmem:[#allocation2 + $0x10] sm:$0xf0]  ;;  %v3431_v53 = vld [vmem:[#allocation2 + $0x14] sm:$0xf0] }
 0x359   : > { %2207 = vrot.lane.b32.xlu2 %v3263_v24, %s3646_s21  ;;  %2262 = vrot.lane.b32.xlu1 %v3259_v25, %s4438_s27  ;;  %v3300_v57 = vor.u32 %v3428_v50, %v3297_v51  ;;  %v3304_v58 = vor.u32 %v3431_v53, %v3303_v52  ;;  %v3331_v3 = vld [vmem:[#allocation2 + $0x14] sm:$0xf0]  ;;  %v3436_v11 = vld [vmem:[#allocation2 + $0x10] sm:$0xf0]  ;;  %v3352_v20 = vld [vmem:[#allocation2 + $0xc] sm:$0xf] }
 0x35a   : > { %2205 = vrot.lane.b32.xlu0 %v3259_v25, %s3646_s21  ;;  %v2132_v27 = vsel %vm1250_vm3, %v2121_v26, 0  ;;  %v3334_v2 = vor.u32 %v3435_v63, %v3331_v3  ;;  %v3330_v14 = vor.u32 %v3436_v11, %v3329_v10  ;;  %v3439_v17 = vld [vmem:[#allocation2 + $0x10] sm:$0xf0]  ;;  %v3441_v25 = vld [vmem:[#allocation2 + $0x8] sm:$0xf]  ;;  %v406_v50 = vld [vmem:[%s4401_s9] sm:$0xff] }
 0x35b   : > { %2167 = vmatpush.bf16.msrb.mxu2 %v2132_v27  ;;  %v3345_v18 = vor.u32 %v3439_v17, %v3344_v15  ;;  %v3361_v26 = vld [vmem:[#allocation2 + $0x14] sm:$0xf0]  ;;  %v3438_v27 = vld [vmem:[#allocation2 + $0x8] sm:$0xf]  ;;  %v3445_v31 = vld [vmem:[#allocation2 + $0x10] sm:$0xf0] }
 0x35c   : > { %v3442_v35 = vld [vmem:[#allocation2 + $0x10] sm:$0xf0]  ;;  %v3376_v22 = vld [vmem:[#allocation2 + $0x14] sm:$0xf0]  ;;  %v3367_v39 = vld [vmem:[#allocation2 + $0xc] sm:$0xf] }
 0x35d   : > { %v3379_v40 = vor.u32 %v3444_v37, %v3376_v22  ;;  %v3432_v10 = vld [vmem:[#allocation2 + $0x8] sm:$0xf]  ;;  %v3316_v11 = vld [vmem:[#allocation2 + $0x14] sm:$0xf0] }
 0x35f   : > { %v3264_v30 = vld [vmem:[#allocation2 + $0x18] sm:$0xf0] }
 0x360   : > { %v3267_v1 = vor.u32 %v3421_v28, %v3264_v30  ;;  %v3286_v55 = vld [vmem:[#allocation2 + $0x18] sm:$0xf0]  ;;  %v2115_v28 = vpop.permute.xlu1 %2114  ;;  %v3364_v30 = vor.u32 %v3441_v25, %v3361_v26  ;;  %v3433_v25 = vld [vmem:[#allocation2 + $0x10] sm:$0xf0]  ;;  %v3322_v26 = vld [vmem:[#allocation2 + $0xc] sm:$0xf] }
 0x361   : > { %2264 = vrot.lane.b32.xlu2 %v3263_v24, %s4438_s27  ;;  %v3289_v60 = vor.u32 %v3425_v54, %v3286_v55  ;;  %v3305_v62 = vld [vmem:[#allocation2 + $0x18] sm:$0xf0]  ;;  %3251 = vmatmul.msk.bf16.vlgmr.msrb.gmra.mxu2 %vm1246_vm4, %v2115_v28 }
 0x362   : > { %2266 = vrot.lane.b32.xlu1 %v3267_v1, %s4438_s27  ;;  %2209 = vrot.lane.b32.xlu0 %v3267_v1, %s3646_s21  ;;  %v3308_v6 = vor.u32 %v3429_v59, %v3305_v62  ;;  %v3437_v9 = vld [vmem:[#allocation2 + $0x18] sm:$0xf0] }
 0x363   : > { %v3338_v12 = vor.u32 %v3437_v9, %v3337_v0  ;;  %v3440_v24 = vld [vmem:[#allocation2 + $0x18] sm:$0xf0]  ;;  %3249 = vmatmul.msk.bf16.vlgmr.msrb.gmra.mxu0 %vm1246_vm4, %v2115_v28  ;;  %3250 = vmatmul.msk.bf16.vlgmr.msrb.gmra.mxu1 %vm1246_vm4, %v2115_v28 }
 0x364   : > { %v3353_v4 = vor.u32 %v3440_v24, %v3352_v20  ;;  %v3443_v34 = vld [vmem:[#allocation2 + $0x18] sm:$0xf0]  ;;  %v3319_v20 = vor.u32 %v3432_v10, %v3316_v11  ;;  %v3314_v24 = vld [vmem:[#allocation2 + $0x4] sm:$0xf] }
 0x365   : > { %v3368_v41 = vor.u32 %v3443_v34, %v3367_v39 }
 0x368   : > { %v2186_v52 = vpop.permute.xlu1 %2185 }
 0x369   : > { %2342 = vrot.lane.b32.xlu2 %v3277_v36, %s3648_s13 }
 0x36a   : > { %2324 = vrot.lane.b32.xlu1 %v2322_v56, %s4439_s15  ;;  %2260 = vrot.lane.b32.xlu0 %v4193_v44, %s4438_s27  ;;  %v2639_v44 = vld [vmem:[%s4398_s6] sm:$0x3]  ;;  %s3669_s15 = smov 16  }
 0x36b   : > { %2645 = vst [vmem:[#allocation1] ss:$4 sm:$0xff] %v2639_v44  ;;  %v3346_v56 = vld [vmem:[#allocation2 + $0x14] sm:$0xf0] }
 0x36c   : > { %v3349_v1 = vor.u32 %v3438_v27, %v3346_v56  ;;  %v3434_v27 = vld [vmem:[#allocation2 + $0x18] sm:$0xf0] }
 0x371   : > { %2346 = vrot.lane.b32.xlu2 %v3285_v46, %s3648_s13  ;;  %v3382_v46 = vld [vmem:[#allocation2 + $0xc] sm:$0xf] }
 0x372   : > { %2428 = vrot.lane.b32.xlu1 %v3296_v45, %s3650_s23  ;;  %2344 = vrot.lane.b32.xlu0 %v3281_v47, %s3648_s13  ;;  %v2646_v61 = vld.sshfl [vmem:[#allocation1] sm:$0xff pattern:$0x73625140]  ;;  %v2204_v45 = vpop.permute.xlu2 %2203 }
 0x373   : > { %2725 = vst [vmem:[#allocation1] ss:$4 sm:$0xff] %v2719_v49  ;;  %v3446_v47 = vld [vmem:[#allocation2 + $0x18] sm:$0xf0] }
 0x374   : > { %v3383_v44 = vor.u32 %v3446_v47, %v3382_v46 }
 0x379   : > { %2430 = vrot.lane.b32.xlu2 %v3300_v57, %s3650_s23 }
 0x37a   : > { %2432 = vrot.lane.b32.xlu1 %v3304_v58, %s3650_s23  ;;  %2348 = vrot.lane.b32.xlu0 %v3289_v60, %s3648_s13  ;;  %s4440_s13 = smov 64   ;;  %v2726_v36 = vld.sshfl [vmem:[#allocation1] sm:$0xff pattern:$0x73625140] }
 0x381   : > { %2434 = vrot.lane.b32.xlu2 %v3308_v6, %s3650_s23  ;;  %s4441_s23 = smov 111  }
 0x382   : > { %2585 = vrot.lane.b32.xlu1 %v3334_v2, %s3653_s25  ;;  %2410 = vrot.lane.b32.xlu0 %v2408_v32, %s3657_s30  ;;  %s3668_s30 = smov 48   ;;  %v3359_v32 = vld [vmem:[#allocation2 + $0x4] sm:$0xf] }
 0x383   : > { %v3360_v21 = vor.u32 %v3442_v35, %v3359_v32 }
 0x389   : > { %2587 = vrot.lane.b32.xlu2 %v3338_v12, %s3653_s25 }
 0x38a   : > { %2583 = vrot.lane.b32.xlu1 %v3330_v14, %s3653_s25  ;;  %2496 = vrot.lane.b32.xlu0 %v2494_v38, %s4440_s13  ;;  %s4443_s25 = smov 110   ;;  %v3375_v38 = vor.u32 %v3445_v31, %v3374_v13  ;;  %v3315_v13 = vor.u32 %v3433_v25, %v3314_v24  ;;  %v3323_v31 = vor.u32 %v3434_v27, %v3322_v26 }
 0x391   : > { %2663 = vrot.lane.b32.xlu2 %v3345_v18, %s4441_s23 }
 0x392   : > { %2648 = vrot.lane.b32.xlu1 %v2646_v61, %s4442_s28  ;;  %2568 = vrot.lane.b32.xlu0 %v2566_v48, %s3668_s30 }
 0x399   : > { %2667 = vrot.lane.b32.xlu2 %v3353_v4, %s4441_s23 }
 0x39a   : > { %2745 = vrot.lane.b32.xlu1 %v3364_v30, %s4443_s25  ;;  %2665 = vrot.lane.b32.xlu0 %v3349_v1, %s4441_s23 }
 0x3a1   : > { %2728 = vrot.lane.b32.xlu2 %v2726_v36, %s3669_s15  ;;  %s2989_s15 = scalar_lea.sflag [#allocation5], %s3801_s26 }
 0x3a2   : > { %2817 = vrot.lane.b32.xlu1 %v3375_v38, %s4436_s20  ;;  %2743 = vrot.lane.b32.xlu0 %v3360_v21, %s4443_s25 }
 0x3a9   : > { %2819 = vrot.lane.b32.xlu2 %v3379_v40, %s4436_s20 }
 0x3aa   : > { %2747 = vrot.lane.b32.xlu0 %v3368_v41, %s4443_s25 }
 0x3b2   : > { %2821 = vrot.lane.b32.xlu0 %v3383_v44, %s4436_s20 }
 0x3b3   : > { %v2208_v48 = vpop.permute.xlu2 %2207 }
 0x3ba   : > { %409 = vperm.xlu0 %3523, %v406_v50  }
 0x3bb   : > { %v2265_v51 = vpop.permute.xlu2 %2264 }
 0x3c3   : > { %v2343_v53 = vpop.permute.xlu2 %2342 }
 0x3cb   : > { %v2263_v54 = vpop.permute.xlu1 %2262  ;;  %v2347_v61 = vpop.permute.xlu2 %2346 }
 0x3cc   : > { %v2269_v55 = vsel %vm566_vm6, %v2263_v54, %v2265_v51  ;;  %v2206_v57 = vpop.permute.xlu0 %2205 }
 0x3cd   : > { %v2211_v58 = vsel %vm503_vm7, %v2204_v45, %v2206_v57  ;;  %v2212_v60 = vsel %vm503_vm7, %v2206_v57, %v2208_v48  ;;  %v2873_v57 = vld [vmem:[%s4399_s7] sm:$0xf] }
 0x3ce   : > { %2228 = vmatpush.bf16.msrb.mxu3 %v2211_v58  ;;  %2241 = vmatpush.bf16.msra.mxu0 %v2212_v60 }
 0x3cf   : > { %2876 = vperm.xlu1 %3524, %v2873_v57  }
 0x3d1   : > { %3268 = vmatmul.msk.bf16.vlgmr.msrb.gmra.mxu3 %vm2217_vm5, %v2186_v52  ;;  %3269 = vmatmul.msk.bf16.vlgmr.msra.gmra.mxu0 %vm2217_vm5, %v2186_v52 }
 0x3d2   : > { %2296 = vmatpush.bf16.msra.mxu3 %v2269_v55 }
 0x3d3   : > { %v2431_v3 = vpop.permute.xlu2 %2430 }
 0x3d4   : > { %v2267_v49 = vpop.permute.xlu1 %2266  ;;  %v2210_v59 = vpop.permute.xlu0 %2209 }
 0x3d5   : > { %v2270_v62 = vsel %vm566_vm6, %v2265_v51, %v2267_v49  ;;  %v2213_v63 = vsel %vm503_vm7, %v2208_v48, %v2210_v59 }
 0x3d6   : > { %2254 = vmatpush.bf16.msra.mxu1 %v2213_v63  ;;  %2309 = vmatpush.bf16.msrb.mxu0 %v2270_v62 }
 0x3d9   : > { %3270 = vmatmul.msk.bf16.vlgmr.msra.gmra.mxu1 %vm2217_vm5, %v2186_v52 }
 0x3db   : > { %v2435_v9 = vpop.permute.xlu2 %2434 }
 0x3dc   : > { %v2325_v6 = vpop.permute.xlu1 %2324  ;;  %v2261_v2 = vpop.permute.xlu0 %2260 }
 0x3dd   : > { %v2268_v0 = vsel %vm566_vm6, %v2261_v2, %v2263_v54  ;;  %vm2986_vm6 = vcmask 556032  }
 0x3de   : > { %2283 = vmatpush.bf16.msra.mxu2 %v2268_v0 }
 0x3e0   : > { %v4304_v54 = vpop.f32.mrf.mxu0  ;;  %v4306_v55 = vpop.f32.mrf.mxu1 }
 0x3e1   : > { %3272 = vmatmul.msk.bf16.vlgmr.msra.gmra.mxu3 %vm2217_vm5, %v4190_v29  ;;  %3273 = vmatmul.msk.bf16.vlgmr.msrb.gmra.mxu0 %vm2217_vm5, %v4190_v29 }
 0x3e2   : > { %3271 = vmatmul.msk.bf16.vlgmr.msra.gmra.mxu2 %vm2217_vm5, %v4190_v29 }
 0x3e3   : > { %v2588_v29 = vpop.permute.xlu2 %2587 }
 0x3e4   : > { %v2429_v12 = vpop.permute.xlu1 %2428  ;;  %v2345_v14 = vpop.permute.xlu0 %2344 }
 0x3e5   : > { %v2436_v15 = vsel %vm732_vm9, %v2429_v12, %v2431_v3  ;;  %v2350_v17 = vsel %vm647_vm8, %v2343_v53, %v2345_v14  ;;  %v2351_v18 = vsel %vm647_vm8, %v2345_v14, %v2347_v61  ;;  %v4312_v58 = vpop.f32.mrf.mxu2  ;;  %v2916_v12 = vld [vmem:[%s4400_s8] sm:$0xf] }
 0x3e6   : > { %2366 = vmatpush.bf16.msrb.mxu1 %v2350_v17  ;;  %2379 = vmatpush.bf16.msrb.mxu2 %v2351_v18  ;;  %v2918_v17 = vunpack.c.l.b16 %v2916_v12 }
 0x3e7   : > { %2452 = vmatpush.bf16.msra.mxu0 %v2436_v15 }
 0x3e8   : > { %v2145_v49 = vpop.f32.mrf.mxu0  ;;  %v2158_v59 = vpop.f32.mrf.mxu1 }
 0x3e9   : > { %3290 = vmatmul.msk.bf16.vlgmr.msrb.gmra.mxu1 %vm2217_vm5, %v2325_v6 }
 0x3eb   : > { %2537 = vmatpush.bf16.msrb.mxu0 %v3319_v20  ;;  %v2664_v36 = vpop.permute.xlu2 %2663  ;;  %v2919_v20 = vpack.c.b16 %v2918_v17, %v2918_v17 }
 0x3ec   : > { %v2433_v56 = vpop.permute.xlu1 %2432  ;;  %v2349_v4 = vpop.permute.xlu0 %2348 }
 0x3ed   : > { %v2437_v28 = vsel %vm732_vm9, %v2431_v3, %v2433_v56  ;;  %v2438_v30 = vsel %vm732_vm9, %v2433_v56, %v2435_v9  ;;  %v2352_v1 = vsel %vm647_vm8, %v2347_v61, %v2349_v4  ;;  %v2171_v62 = vpop.f32.mrf.mxu2  ;;  %2920 = vrot.lane.b32.xlu2 %v2919_v20, %s4437_s29  ;;  %s3450_s29 = smul.u32 24, %s3746_s17 }
 0x3ee   : > { %2392 = vmatpush.bf16.msrb.mxu3 %v2352_v1  ;;  %2465 = vmatpush.bf16.msra.mxu1 %v2437_v28 }
 0x3ef   : > { %2478 = vmatpush.bf16.msra.mxu2 %v2438_v30  ;;  %s3000_s25 = scalar_lea.hbm %s4402_s10, %s3450_s29 }
 0x3f0   : > { %s3004_s17 = sshll.u32 %s3000_s25, 4  ;;  %s3005_s17 = int_to_ptr.hbm [resolvable:$true] %s3004_s17 }
 0x3f1   : > { %3292 = vmatmul.msk.bf16.vlgmr.msrb.gmra.mxu3 %vm2217_vm5, %v2325_v6  ;;  %s3590_s12 = sshra.s32 %s3005_s17, 4  ;;  %s3591_s12 = int_to_ptr.hbm [resolvable:$true] %s3590_s12 }
 0x3f2   : > { %2524 = vmatpush.bf16.msra.mxu3 %v3315_v13  ;;  %2550 = vmatpush.bf16.msrb.mxu1 %v3323_v31  ;;  %s3592_s21 = scalar_lea.hbm %s3591_s12, 24  ;;  %p3597_p4 = scmp.lt.s32.totalorder %s3591_s12, %s4402_s10 }
 0x3f3   : > { %3291 = vmatmul.msk.bf16.vlgmr.msrb.gmra.mxu2 %vm2217_vm5, %v2325_v6  ;;  %v2668_v39 = vpop.permute.xlu2 %2667  ;;  %v2799_v6 = vld [vmem:[%s4398_s6 + $0x2] sm:$0x3]  ;;  %p3593_p6 = scmp.ne.s32.totalorder %s3591_s12, %s3592_s21  ;;  %p3598_p5 = scmp.lt.s32.totalorder %s3596_s18, %s3592_s21 }
 0x3f4   : > { %v2586_v32 = vpop.permute.xlu1 %2585  ;;  %v2411_v35 = vpop.permute.xlu0 %2410 }
 0x3f5   : > { %v2590_v38 = vsel %vm884_vm10, %v2586_v32, %v2588_v29  ;;  %3309 = vmatmul.msk.bf16.vlgmr.msra.gmra.mxu0 %vm2217_vm5, %v2411_v35  ;;  %p3594_p2 = pnand %p3593_p6, %p3771_p11  ;;  %p3599_p7 = por %p3598_p5, %p3597_p4 }
 0x3f6   : > { %2630 = vmatpush.bf16.msra.mxu0 %v2588_v29  ;;  %2617 = vmatpush.bf16.msrb.mxu3 %v2590_v38 }
 0x3f7   : > { %p3595_p3 = pneg %p3594_p2 }
 0x3f9   : > { %3310 = vmatmul.msk.bf16.vlgmr.msra.gmra.mxu1 %vm2217_vm5, %v2411_v35  ;;  %p3600_p8 = pnand %p3599_p7, %p3595_p3 }
 0x3fb   : > { %v2729_v41 = vpop.permute.xlu2 %2728 }
 0x3fc   : > { %v2584_v21 = vpop.permute.xlu1 %2583  ;;  %v2497_v37 = vpop.permute.xlu0 %2496 }
 0x3fd   : > { %v2589_v22 = vsel %vm884_vm10, %v2584_v21, %v2586_v32 }
 0x3fe   : > { %2604 = vmatpush.bf16.msrb.mxu2 %v2589_v22 }
 0x401   : > { %3324 = vmatmul.msk.bf16.vlgmr.msra.gmra.mxu3 %vm2217_vm5, %v2497_v37 }
 0x402   : > { %2710 = vmatpush.bf16.msra.mxu3 %v2668_v39 }
 0x403   : > { %3311 = vmatmul.msk.bf16.vlgmr.msra.gmra.mxu2 %vm2217_vm5, %v2411_v35  ;;  %v2820_v48 = vpop.permute.xlu2 %2819 }
 0x404   : > { %v2649_v34 = vpop.permute.xlu1 %2648  ;;  %v2569_v40 = vpop.permute.xlu0 %2568 }
 0x405   : > { %3325 = vmatmul.msk.bf16.vlgmr.msrb.gmra.mxu0 %vm2217_vm5, %v2497_v37 }
 0x409   : > { %3326 = vmatmul.msk.bf16.vlgmr.msrb.gmra.mxu1 %vm2217_vm5, %v2497_v37 }
 0x40c   : > { %v2746_v45 = vpop.permute.xlu1 %2745  ;;  %v2666_v46 = vpop.permute.xlu0 %2665 }
 0x40d   : > { %v2669_v47 = vsel %vm964_vm11, %v2664_v36, %v2666_v46  ;;  %v2670_v44 = vsel %vm964_vm11, %v2666_v46, %v2668_v39 }
 0x40e   : > { %2684 = vmatpush.bf16.msra.mxu1 %v2669_v47  ;;  %2697 = vmatpush.bf16.msra.mxu2 %v2670_v44 }
 0x411   : > { %3340 = vmatmul.msk.bf16.vlgmr.msrb.gmra.mxu3 %vm2217_vm5, %v2569_v40 }
 0x413   : > { %3339 = vmatmul.msk.bf16.vlgmr.msrb.gmra.mxu2 %vm2217_vm5, %v2569_v40 }
 0x414   : > { %v2818_v50 = vpop.permute.xlu1 %2817  ;;  %v2744_v51 = vpop.permute.xlu0 %2743 }
 0x415   : > { %v2823_v52 = vsel %vm1124_vm13, %v2818_v50, %v2820_v48  ;;  %v2749_v53 = vsel %vm1044_vm12, %v2744_v51, %v2746_v45  ;;  %3341 = vmatmul.msk.bf16.vlgmr.msra.gmra.mxu0 %vm2217_vm5, %v2569_v40 }
 0x416   : > { %2764 = vmatpush.bf16.msrb.mxu0 %v2749_v53  ;;  %2838 = vmatpush.bf16.msrb.mxu3 %v2823_v52 }
 0x419   : > { %3354 = vmatmul.msk.bf16.vlgmr.msra.gmra.mxu1 %vm2217_vm5, %v2649_v34 }
 0x41c   : > { %v2748_v60 = vpop.permute.xlu0 %2747 }
 0x41d   : > { %v2750_v61 = vsel %vm1044_vm12, %v2746_v45, %v2748_v60  ;;  %2790 = vmatpush.bf16.msrb.mxu2 %v2748_v60 }
 0x41e   : > { %2777 = vmatpush.bf16.msrb.mxu1 %v2750_v61 }
 0x421   : > { %3356 = vmatmul.msk.bf16.vlgmr.msra.gmra.mxu3 %vm2217_vm5, %v2649_v34 }
 0x423   : > { %3355 = vmatmul.msk.bf16.vlgmr.msra.gmra.mxu2 %vm2217_vm5, %v2649_v34 }
 0x424   : > { %v2822_v63 = vpop.permute.xlu0 %2821 }
 0x425   : > { %v2824_v3 = vsel %vm1124_vm13, %v2820_v48, %v2822_v63  ;;  %3369 = vmatmul.msk.bf16.vlgmr.msrb.gmra.mxu0 %vm2217_vm5, %v2729_v41  ;;  %2864 = vmatpush.bf16.msra.mxu1 %v2822_v63 }
 0x426   : > { %2851 = vmatpush.bf16.msra.mxu0 %v2824_v3 }
 0x429   : > { %3370 = vmatmul.msk.bf16.vlgmr.msrb.gmra.mxu1 %vm2217_vm5, %v2729_v41 }
 0x42c   : > { %v410_v23 = vpop.permute.xlu0 %409 }
 0x431   : > { %3384 = vmatmul.msk.bf16.vlgmr.msrb.gmra.mxu3 %vm2217_vm5, %v2799_v6 }
 0x433   : > { %3371 = vmatmul.msk.bf16.vlgmr.msrb.gmra.mxu2 %vm2217_vm5, %v2729_v41 }
 0x435   : > { %3385 = vmatmul.msk.bf16.vlgmr.msra.gmra.mxu0 %vm2217_vm5, %v2799_v6 }
 0x439   : > { %3386 = vmatmul.msk.bf16.vlgmr.msra.gmra.mxu1 %vm2217_vm5, %v2799_v6 }
 0x44e   : > { %v2243_v2 = vpop.f32.mrf.mxu0 }
 0x454   : > { %v2230_v0 = vpop.f32.mrf.mxu3 }
 0x456   : > { %v2245_v9 = vpop.f32.mrf.mxu0  ;;  %v2256_v10 = vpop.f32.mrf.mxu1 }
 0x45c   : > { %v2232_v11 = vpop.f32.mrf.mxu3 }
 0x45e   : > { %v2311_v14 = vpop.f32.mrf.mxu0  ;;  %v2258_v15 = vpop.f32.mrf.mxu1 }
 0x45f   : > { %v2312_v18 = vadd.f32 %v2311_v14, %v2256_v10 }
 0x464   : > { %v2298_v24 = vpop.f32.mrf.mxu3 }
 0x465   : > { %v2299_v25 = vadd.f32 %v2298_v24, %v2243_v2  ;;  %v2285_v29 = vpop.f32.mrf.mxu2 }
 0x466   : > { %v2286_v26 = vadd.f32 %v2285_v29, %v2230_v0  ;;  %v2313_v27 = vpop.f32.mrf.mxu0  ;;  %v2368_v56 = vpop.f32.mrf.mxu1 }
 0x468   : > { %v2398_v4 = vadd.f32 %v2368_v56, %v2286_v26 }
 0x46c   : > { %v2300_v28 = vpop.f32.mrf.mxu3 }
 0x46d   : > { %v2287_v30 = vpop.f32.mrf.mxu2  ;;  %v2877_v28 = vpop.permute.xlu1 %2876 }
 0x46e   : > { %v2370_v1 = vpop.f32.mrf.mxu1 }
 0x472   : > { %v2454_v13 = vpop.f32.mrf.mxu0 }
 0x473   : > { %v2484_v6 = vadd.f32 %v2454_v13, %v2398_v4 }
 0x474   : > { %v2394_v31 = vpop.f32.mrf.mxu3 }
 0x475   : > { %v2400_v0 = vadd.f32 %v2394_v31, %v2312_v18 }
 0x476   : > { %v2381_v32 = vpop.f32.mrf.mxu2  ;;  %v2467_v35 = vpop.f32.mrf.mxu1 }
 0x477   : > { %v2399_v49 = vadd.f32 %v2381_v32, %v2299_v25 }
 0x479   : > { %v2485_v3 = vadd.f32 %v2467_v35, %v2399_v49 }
 0x47a   : > { %v2456_v36 = vpop.f32.mrf.mxu0 }
 0x47c   : > { %v2396_v38 = vpop.f32.mrf.mxu3 }
 0x47e   : > { %v2383_v21 = vpop.f32.mrf.mxu2  ;;  %v2469_v37 = vpop.f32.mrf.mxu1 }
 0x482   : > { %v2539_v22 = vpop.f32.mrf.mxu0 }
 0x483   : > { %v2557_v2 = vadd.f32 %v2539_v22, %v2485_v3 }
 0x484   : > { %v2526_v39 = vpop.f32.mrf.mxu3 }
 0x485   : > { %v2556_v10 = vadd.f32 %v2526_v39, %v2484_v6 }
 0x486   : > { %v2480_v34 = vpop.f32.mrf.mxu2  ;;  %v2552_v40 = vpop.f32.mrf.mxu1 }
 0x487   : > { %v2486_v12 = vadd.f32 %v2480_v34, %v2400_v0 }
 0x489   : > { %v2558_v29 = vadd.f32 %v2552_v40, %v2486_v12 }
 0x48a   : > { %v2541_v41 = vpop.f32.mrf.mxu0 }
 0x48c   : > { %v2528_v45 = vpop.f32.mrf.mxu3 }
 0x48e   : > { %v2482_v46 = vpop.f32.mrf.mxu2  ;;  %v2554_v47 = vpop.f32.mrf.mxu1 }
 0x492   : > { %v2632_v44 = vpop.f32.mrf.mxu0 }
 0x493   : > { %v2638_v25 = vadd.f32 %v2632_v44, %v2558_v29 }
 0x494   : > { %v2619_v48 = vpop.f32.mrf.mxu3 }
 0x495   : > { %v2637_v11 = vadd.f32 %v2619_v48, %v2557_v2 }
 0x496   : > { %v2606_v50 = vpop.f32.mrf.mxu2  ;;  %v2686_v51 = vpop.f32.mrf.mxu1 }
 0x497   : > { %v2636_v15 = vadd.f32 %v2606_v50, %v2556_v10 }
 0x499   : > { %v2716_v26 = vadd.f32 %v2686_v51, %v2636_v15 }
 0x49a   : > { %v2634_v52 = vpop.f32.mrf.mxu0 }
 0x49c   : > { %v2621_v53 = vpop.f32.mrf.mxu3 }
 0x49e   : > { %v2608_v57 = vpop.f32.mrf.mxu2  ;;  %v2688_v60 = vpop.f32.mrf.mxu1 }
 0x4a2   : > { %v2766_v61 = vpop.f32.mrf.mxu0 }
 0x4a3   : > { %v2796_v30 = vadd.f32 %v2766_v61, %v2716_v26 }
 0x4a4   : > { %v2712_v59 = vpop.f32.mrf.mxu3 }
 0x4a5   : > { %v2718_v4 = vadd.f32 %v2712_v59, %v2638_v25 }
 0x4a6   : > { %v2699_v62 = vpop.f32.mrf.mxu2  ;;  %v2779_v63 = vpop.f32.mrf.mxu1 }
 0x4a7   : > { %v2717_v17 = vadd.f32 %v2699_v62, %v2637_v11 }
 0x4a9   : > { %v2797_v27 = vadd.f32 %v2779_v63, %v2717_v17 }
 0x4aa   : > { %v2768_v9 = vpop.f32.mrf.mxu0 }
 0x4ac   : > { %v2714_v14 = vpop.f32.mrf.mxu3 }
 0x4ae   : > { %v2701_v20 = vpop.f32.mrf.mxu2  ;;  %v2781_v24 = vpop.f32.mrf.mxu1 }
 0x4b2   : > { %v2853_v56 = vpop.f32.mrf.mxu0 }
 0x4b3   : > { %v2871_v1 = vadd.f32 %v2853_v56, %v2797_v27 }
 0x4b4   : > { %v2840_v13 = vpop.f32.mrf.mxu3 }
 0x4b5   : > { %v2880_v18 = vadd.f32 %v2877_v28, %v2871_v1  ;;  %v2870_v32 = vadd.f32 %v2840_v13, %v2796_v30 }
 0x4b6   : > { %v2792_v31 = vpop.f32.mrf.mxu2  ;;  %v2866_v36 = vpop.f32.mrf.mxu1 }
 0x4b7   : > { %v2798_v35 = vadd.f32 %v2792_v31, %v2718_v4  ;;  %v2886_v38 = vmul.f32 0.044715, %v2880_v18  ;;  %v2879_v21 = vadd.f32 %v2877_v28, %v2870_v32  ;;  %v2883_v63 = vmul.f32 0.5, %v2880_v18  ;;  %v2921_v4 = vpop.permute.xlu2 %2920 }
 0x4b8   : > { %v444_v31 = vadd.f32 %v3968_v5, %v410_v23  ;;  %v457_v32 = vadd.f32 %v3983_v16, %v410_v23 }
 0x4b9   : > { %v2872_v37 = vadd.f32 %v2866_v36, %v2798_v35  ;;  %v2889_v22 = vmul.f32 %v2886_v38, %v2880_v18  ;;  %v2885_v39 = vmul.f32 0.044715, %v2879_v21  ;;  %v2882_v2 = vmul.f32 0.5, %v2879_v21  ;;  %v3543_v35 = vld [vmem:[%s3805_s19 + $0x10] sm:$0xff]  ;;  %v3544_v38 = vld [vmem:[%s3805_s19] sm:$0xff] }
 0x4ba   : > { %v2855_v40 = vpop.f32.mrf.mxu0 }
 0x4bb   : > { %v2881_v34 = vadd.f32 %v2877_v28, %v2872_v37  ;;  %v2892_v41 = vmul.f32 %v2889_v22, %v2880_v18  ;;  %v2888_v45 = vmul.f32 %v2885_v39, %v2879_v21  ;;  %v3545_v37 = vld [vmem:[%s3805_s19 + $0x8] sm:$0xff]  ;;  %s3002_s19 = sshll.u32 %s3811_s22, 4  ;;  %s3003_s19 = int_to_ptr.vmem [resolvable:$true] %s3002_s19 }
 0x4bc   : > { %v2842_v47 = vpop.f32.mrf.mxu3  ;;  %v474_v22 = vadd.f32 %v3545_v37, %v457_v32 }
 0x4bd   : > { %v2887_v46 = vmul.f32 0.044715, %v2881_v34  ;;  %v2895_v44 = vadd.f32 %v2892_v41, %v2880_v18  ;;  %v2891_v48 = vmul.f32 %v2888_v45, %v2879_v21  ;;  %v2884_v12 = vmul.f32 0.5, %v2881_v34 }
 0x4be   : > { %v2794_v50 = vpop.f32.mrf.mxu2  ;;  %v2868_v52 = vpop.f32.mrf.mxu1  ;;  %v470_v18 = vadd.f32 %v3973_v7, %v410_v23  ;;  %v1300_v40 = vadd.f32 %v4172_v43, %v474_v22 }
 0x4bf   : > { %v2890_v51 = vmul.f32 %v2887_v46, %v2881_v34  ;;  %v2898_v53 = vmul.f32 0.7978846, %v2895_v44  ;;  %v2894_v57 = vadd.f32 %v2891_v48, %v2879_v21  ;;  %v473_v21 = vadd.f32 %v3544_v38, %v444_v31 }
 0x4c0   : > { %v475_v36 = vadd.f32 %v3543_v35, %v470_v18 }
 0x4c1   : > { %v2893_v60 = vmul.f32 %v2890_v51, %v2881_v34  ;;  %3537 = vtanh.f32 %v2898_v53  ;;  %v2897_v61 = vmul.f32 0.7978846, %v2894_v57 }
 0x4c2   : > { %v1301_v39 = vadd.f32 %v4163_v33, %v475_v36  ;;  %v2174_v33 = vadd.f32 %v4306_v55, %v1300_v40 }
 0x4c3   : > { %v2896_v49 = vadd.f32 %v2893_v60, %v2881_v34  ;;  %3539 = vtanh.f32 %v2897_v61  ;;  %v1299_v34 = vadd.f32 %v4170_v42, %v473_v21 }
 0x4c4   : > { %v2175_v7 = vadd.f32 %v4312_v58, %v1301_v39 }
 0x4c5   : > { %v2899_v59 = vmul.f32 0.7978846, %v2896_v49  ;;  %v2173_v41 = vadd.f32 %v4304_v54, %v1299_v34 }
 0x4c7   : > { %3541 = vtanh.f32 %v2899_v59  ;;  %v3538_v62 = vpop.eup %3537 }
 0x4c8   : > { %v2904_v3 = vadd.f32 1.0, %v3538_v62 }
 0x4c9   : > { %v3540_v6 = vpop.eup %3539 }
 0x4ca   : > { %v2903_v0 = vadd.f32 1.0, %v3540_v6  ;;  %v2907_v9 = vmul.f32 %v2904_v3, %v2883_v63 }
 0x4cc   : > { %v2906_v11 = vmul.f32 %v2903_v0, %v2882_v2  ;;  %v2910_v17 = vsel %vm4017_vm0, %v2907_v9, 0.0 }
 0x4cd   : > { %v3542_v10 = vpop.eup %3541 }
 0x4ce   : > { %v2905_v14 = vadd.f32 1.0, %v3542_v10  ;;  %v2909_v15 = vsel %vm4013_vm15, %v2906_v11, 0.0 }
 0x4cf   : > { %v2912_v20 = vpack.c.bf16 %v2910_v17, %v2909_v15 }
 0x4d0   : > { %v2908_v24 = vmul.f32 %v2905_v14, %v2884_v12 }
 0x4d1   : > { %v2924_v29 = vunpack.c.l.b16 %v2912_v20  ;;  %v2925_v26 = vunpack.c.h.b16 %v2912_v20 }
 0x4d2   : > { %v2911_v27 = vsel %vm4021_vm1, %v2908_v24, 0.0 }
 0x4d3   : > { %v2913_v25 = vpack.c.bf16 %v2911_v27, %v2911_v27  ;;  %v2927_v56 = vpack.c.b16 %v2924_v29, %v2924_v29  ;;  %v2928_v28 = vpack.c.b16 %v2925_v26, %v2925_v26 }
 0x4d5   : > { %v2926_v30 = vunpack.c.l.b16 %v2913_v25  ;;  %v2934_v1 = vsel %vm1250_vm3, %v2927_v56, 0  ;;  %v2937_v8 = vsel %vm1250_vm3, %v2928_v28, 0 }
 0x4d6   : > { %2949 = vmatpush.bf16.msra.mxu2 %v2934_v1  ;;  %2962 = vmatpush.bf16.msra.mxu3 %v2937_v8 }
 0x4d7   : > { %v2929_v19 = vpack.c.b16 %v2926_v30, %v2926_v30 }
 0x4d9   : > { %v2940_v13 = vsel %vm1250_vm3, %v2929_v19, 0  ;;  %3387 = vmatmul.msk.bf16.vlgmr.msra.gmra.mxu2 %vm1246_vm4, %v2921_v4  ;;  %3388 = vmatmul.msk.bf16.vlgmr.msra.gmra.mxu3 %vm1246_vm4, %v2921_v4 }
 0x4da   : > { %2975 = vmatpush.bf16.msrb.mxu0 %v2940_v13 }
 0x4dd   : > { %3389 = vmatmul.msk.bf16.vlgmr.msrb.gmra.mxu0 %vm1246_vm4, %v2921_v4 }
 0x55a   : > { %v2977_v5 = vpop.f32.mrf.mxu0 }
 0x55b   : > { %v2983_v16 = vadd.f32 %v2977_v5, %v2175_v7 }
 0x55c   : > { %v2951_v42 = vpop.f32.mrf.mxu2  ;;  %v2964_v58 = vpop.f32.mrf.mxu3 }
 0x55d   : > { %2987 = vst.msk [vmem:[%s3811_s22 + $0x10] sm:$0xff] %vm2986_vm6, %v2983_v16  ;;  %v2981_v43 = vadd.f32 %v2951_v42, %v2173_v41  ;;  %v2982_v45 = vadd.f32 %v2964_v58, %v2174_v33 }
 0x55f   : > { %2984 = vst [vmem:[%s3811_s22] sm:$0xff] %v2981_v43 }
 0x560   : > { %2985 = vst [vmem:[%s3811_s22 + $0x8] sm:$0xff] %v2982_v45 }
 0x562   : > { %v2979_v46 = vpop.f32.mrf.mxu0 }
 0x563   : > { %3603 = shalt.err (!%p3600_p8)
}
 0x564   : > { %3453 = dma.vmem_to_hbm [thread:$0]  (%p3771_p11), %s3003_s19, 384, %s3005_s17, %s2989_s15   ;;  %v2953_v54 = vpop.f32.mrf.mxu2  ;;  %v2966_v55 = vpop.f32.mrf.mxu3 }
 0x565 PF: > { %s4444_s26 = sld [smem:[#allocation9_spill]]  ;;  %p3460_p10 = pnand %p3077_p9, %p3775_p12 }
 0x567   : > { %p3461_p0 = pneg %p3460_p10 }
 0x56b   : > { %s3016_s23 = sand.u32 1, %s4444_s26  }
 0x56c   : > { %s3017_s29 = scalar_lea.sflag [#allocation5], %s3016_s23 }
 0x56d   : > { %3625 = dma.done.wait (%p3461_p0), %s3017_s29, 384  }
 0x56e   : > { %3627 = vsyncadd (%p3461_p0), %s3017_s29, 4294966912  ;;  %s4446_s16 = sld [smem:[#allocation11_spill]]  ;;  %s4449_s13 = smov %s3634_s14 }
 0x56f   : > { %s4447_s28 = sld [smem:[#allocation10_spill]] }
 0x570   : > { %s4448_s15 = sld [smem:[#allocation12_spill]] }
 0x574   : > { %p23_p11 = scmp.ge.s32.totalorder %s4446_s16, 4  }
 0x575   : > { %s4450_s14 = smov %s4447_s28 }
 0x576   :  { %25 = sbr.rel (!%p23_p11) target bundleno = 5 (0x5), region = 109 }
 0x57b   :  { %3023 = vsyncpa [#allocation4], 1 }
 0x57c   :  { %3025 = vsyncpa [#allocation4 + $0x1], 1 }
 0x57d   :  { %3026 = vsyncpa [#allocation5], 1 }
 0x57e   :  { %3028 = vsyncpa [#allocation5 + $0x1], 1 }

</bundles_post_ra>
